<compile_context>
chip_gen: v7x
topology: tpu7x:2x2x1
jax: 0.10.0
libtpu: 0.0.40
codegen_flags: <defaults>
</compile_context>

<pallas_src>
import functools

import jax
import jax.numpy as jnp
import numpy as np
from jax import lax
from jax.experimental import pallas as pl
from jax.experimental.pallas import tpu as pltpu


def _cdiv(a, b):
    return (a + b - 1) // b


def _round_up(a, b):
    return _cdiv(a, b) * b


def _build_chunks(num_fields, max_pairs_per_chunk):
    """Group field rows i (pairs (i, j), j > i, row-major) into pair-chunks."""
    F = num_fields
    chunks = []
    i = 0
    out_off = 0
    while i < F - 1:
        i_start = i
        cp = 0
        while i < F - 1 and (cp == 0 or cp + (F - 1 - i) <= max_pairs_per_chunk):
            cp += F - 1 - i
            i += 1
        chunks.append((i_start, i, out_off, cp))
        out_off += cp
    max_cp = max(c[3] for c in chunks)
    return tuple(chunks), max_cp


def _pnn_interaction_kernel(x_ref, o_ref, prod_ref, r_ref, *,
                            num_fields, embed_dim, chunks, prod_dtype):
    """One batch tile.

    x_ref:    (TB, F*D)                 lane-dense field embeddings
    o_ref:    (TB, npairs)              packed strict-upper-triangle products
    prod_ref: (TB, max_chunk_pairs*D)   staged per-pair elementwise products
    r_ref:    (max_chunk_pairs*D, max_chunk_pairs)  block-ones reduction matrix
    """
    F, D = num_fields, embed_dim

    # Canonical block-ones reduction matrix, regenerated each step from iotas
    # (no HBM stream, no double-buffered VMEM copy, megacore-safe).
    row = lax.broadcasted_iota(jnp.int32, r_ref.shape, 0)
    col = lax.broadcasted_iota(jnp.int32, r_ref.shape, 1)
    diff = row - col * D
    r_ref[...] = ((diff >= 0) & (diff < D)).astype(prod_dtype)

    # Single full-tile load; field slices are taken from the in-register value.
    x = x_ref[...].astype(jnp.float32)

    for (i_start, i_stop, out_off, chunk_pairs) in chunks:
        col_off = 0
        for i in range(i_start, i_stop):
            k = F - 1 - i
            xi = x[:, i * D:(i + 1) * D]
            rest = x[:, (i + 1) * D:F * D]
            tiled = xi if k == 1 else jnp.concatenate([xi] * k, axis=-1)
            prod_ref[:, col_off * D:(col_off + k) * D] = (
                tiled * rest).astype(prod_dtype)
            col_off += k
        # Segmented sum over embed_dim as one MXU matmul per chunk:
        #   out[b, p] = sum_d prod[b, p*D + d]
        res = jnp.dot(prod_ref[:, :chunk_pairs * D],
                      r_ref[:chunk_pairs * D, :chunk_pairs],
                      preferred_element_type=jnp.float32)
        o_ref[:, out_off:out_off + chunk_pairs] = res.astype(o_ref.dtype)


def inner_product_interaction(feature_emb: jax.Array, *, block_b: int = 1024,
                              interaction_dtype=jnp.bfloat16,
                              max_chunk_cols: int = 2048) -> jax.Array:
    """Pallas implementation of InnerProductInteraction.forward.

    Args:
      feature_emb: (B, num_fields, embed_dim) float array.
      block_b: upper bound on the batch-tile size per grid step.
      interaction_dtype: staging dtype for the pair products / reduction matrix
        (bf16 by default; products are rounded to bf16 before the exact f32
        MXU accumulation, use jnp.float32 for full precision).
      max_chunk_cols: bound on the staged product width per MXU matmul.
    Returns:
      (B, num_fields*(num_fields-1)//2) pairwise inner products, row-major over
      the strict upper triangle (same order as torch.masked_select(triu(k=1))).
    """
    B, F, D = feature_emb.shape
    npairs = F * (F - 1) // 2
    out_dtype = feature_emb.dtype
    if npairs == 0:
        return jnp.zeros((B, 0), out_dtype)

    in_itemsize = jnp.dtype(feature_emb.dtype).itemsize
    prod_dtype = jnp.dtype(interaction_dtype)
    prod_itemsize = prod_dtype.itemsize
    lane = 128

    chunks, max_chunk_pairs = _build_chunks(F, max(1, max_chunk_cols // D))

    # Hard sublane alignment for the batch-tiled blocks (8 f32, 16 bf16, 32 i8).
    align = max(8, 32 // max(in_itemsize, 1))

    # --- VMEM budget -> batch-tile cap (generation-aware, includes padding) --
    vmem_cap = 64 << 20
    try:
        info = pltpu.get_tpu_info()
        for attr in ("vmem_capacity_bytes", "vmem_size_bytes", "vmem_bytes"):
            v = getattr(info, attr, None)
            if v:
                vmem_cap = int(v)
                break
    except Exception:
        pass

    bytes_per_row = (
        2 * _round_up(F * D, lane) * in_itemsize        # input tile, double buffered
        + 2 * _round_up(npairs, lane) * in_itemsize     # output tile, double buffered
        + _round_up(max_chunk_pairs * D, lane) * prod_itemsize)  # prod scratch
    r_bytes = (_round_up(max_chunk_pairs * D, 8)
               * _round_up(max_chunk_pairs, lane) * prod_itemsize)
    fixed_bytes = r_bytes + (2 << 20)                   # R scratch + headroom

    budget = int(0.6 * vmem_cap)
    tb_cap = (budget - fixed_bytes) // bytes_per_row
    tb_cap = max(align, min(int(block_b), int(tb_cap)))
    tb_cap = (tb_cap // align) * align

    # --- balanced batch tiles: >=2/4 steps for megacore, exact divide if we can
    if B >= 64 * align:
        target_steps = 4
    elif B >= 8 * align:
        target_steps = 2
    else:
        target_steps = 1
    target_steps = max(target_steps, _cdiv(B, tb_cap))

    tb = None
    steps = None
    if B % align == 0:
        for s in range(target_steps, min(4 * target_steps, max(1, B // align)) + 1):
            if B % s == 0 and (B // s) % align == 0 and (B // s) <= tb_cap:
                tb, steps = B // s, s
                break
    if tb is None:
        steps = max(_cdiv(B, tb_cap), target_steps)
        tb = _round_up(_cdiv(B, steps), align)
        steps = _cdiv(B, tb)
    b_padded = steps * tb
    pad = b_padded - B

    # Lane-dense 2-D view of the input (free row-major reshape); pad only if a
    # perfectly dividing tile was not found.
    x2d = feature_emb.reshape(B, F * D)
    if pad:
        x2d = jnp.pad(x2d, ((0, pad), (0, 0)))

    footprint = fixed_bytes + tb * bytes_per_row
    vmem_limit = int(min(vmem_cap, max(32 << 20, footprint + (16 << 20))))

    matmul_flops = 2 * b_padded * D * sum(cp * cp for (_, _, _, cp) in chunks)
    cost = pl.CostEstimate(
        flops=int(b_padded * npairs * D + matmul_flops),
        transcendentals=0,
        bytes_accessed=int(b_padded * F * D * in_itemsize
                           + b_padded * npairs * in_itemsize),
    )

    kernel = functools.partial(
        _pnn_interaction_kernel, num_fields=F, embed_dim=D,
        chunks=chunks, prod_dtype=prod_dtype)

    out = pl.pallas_call(
        kernel,
        out_shape=jax.ShapeDtypeStruct((b_padded, npairs), out_dtype),
        grid_spec=pltpu.PrefetchScalarGridSpec(
            num_scalar_prefetch=0,
            grid=(steps,),
            in_specs=[pl.BlockSpec((tb, F * D), lambda i: (i, 0))],
            out_specs=pl.BlockSpec((tb, npairs), lambda i: (i, 0)),
            scratch_shapes=[
                pltpu.VMEM((tb, max_chunk_pairs * D), prod_dtype),
                pltpu.VMEM((max_chunk_pairs * D, max_chunk_pairs), prod_dtype),
            ],
        ),
        compiler_params=pltpu.CompilerParams(
            dimension_semantics=("parallel",),
            vmem_limit_bytes=vmem_limit,
        ),
        cost_estimate=cost,
    )(x2d)

    return out[:B] if pad else out


if __name__ == "__main__":
    # Shapes consistent with the module's forward: (batch, num_fields, embed_dim).
    B, num_fields, embed_dim = 2, 8, 32
    key = jax.random.PRNGKey(0)
    feature_emb = jax.random.normal(key, (B, num_fields, embed_dim),
                                    dtype=jnp.float32)

    iu, ju = np.triu_indices(num_fields, k=1)

    def ref_np(x, f):
        i, j = np.triu_indices(f, k=1)
        x64 = np.asarray(x, dtype=np.float64)
        return np.einsum("bfd,bgd->bfg", x64, x64)[:, i, j]

    npairs = num_fields * (num_fields - 1) // 2

    # 1) f32-staged path, single small tile.
    out = jax.block_until_ready(
        inner_product_interaction(feature_emb, interaction_dtype=jnp.float32))
    assert out.shape == (B, npairs)
    assert np.allclose(np.asarray(out, np.float64), ref_np(feature_emb, num_fields),
                       atol=1e-1, rtol=2e-2)

    # 2) default bf16-staged path, multi-step balanced grid (B=1000 -> 5 x 200).
    B2 = 1000
    fe2 = jax.random.normal(jax.random.PRNGKey(1), (B2, num_fields, embed_dim),
                            dtype=jnp.float32)
    out2 = jax.block_until_ready(inner_product_interaction(fe2, block_b=256))
    assert out2.shape == (B2, npairs)
    assert np.allclose(np.asarray(out2, np.float64), ref_np(fe2, num_fields),
                       atol=1e-1, rtol=2e-2)

    # 3) larger num_fields -> multiple pair-chunks (the blocked large-F path).
    B3, F3, D3 = 64, 16, 32
    fe3 = jax.random.normal(jax.random.PRNGKey(2), (B3, F3, D3), dtype=jnp.float32)
    out3 = jax.block_until_ready(
        inner_product_interaction(fe3, max_chunk_cols=1024))
    assert out3.shape == (B3, F3 * (F3 - 1) // 2)
    assert np.allclose(np.asarray(out3, np.float64), ref_np(fe3, F3),
                       atol=1e-1, rtol=2e-2)

    print("KERNEL_OK")
</pallas_src>

<mosaic_0001>
module attributes {stable_mosaic.version = 11 : i64} {
  func.func @_pnn_interaction_kernel(%arg0: i32, %arg1: memref<8x256xf32, #tpu.memory_space<vmem>>, %arg2: memref<8x28xf32, #tpu.memory_space<vmem>>, %arg3: memref<8x896xf32, #tpu.memory_space<vmem>>, %arg4: memref<896x28xf32, #tpu.memory_space<vmem>>) attributes {dimension_semantics = [#tpu.dimension_semantics<parallel>], iteration_bounds = array<i64: 1>, scalar_prefetch = 0 : i64, scratch_operands = 2 : i64, tpu.core_type = #tpu.core_type<tc>, window_params = [{transform_indices = @transform_0, window_bounds = array<i64: 8, 256>}, {transform_indices = @transform_1, window_bounds = array<i64: 8, 28>}]} {
    %0 = tpu.iota {dimensions = array<i32: 0>} : vector<896x28xi32>
    %1 = tpu.iota {dimensions = array<i32: 1>} : vector<896x28xi32>
    %c32_i32 = arith.constant 32 : i32
    %2 = vector.broadcast %c32_i32 : i32 to vector<896x28xi32>
    %3 = arith.muli %1, %2 : vector<896x28xi32>
    %4 = arith.subi %0, %3 : vector<896x28xi32>
    %c0_i32 = arith.constant 0 : i32
    %5 = vector.broadcast %c0_i32 : i32 to vector<896x28xi32>
    %6 = arith.cmpi sge, %4, %5 : vector<896x28xi32>
    %c32_i32_0 = arith.constant 32 : i32
    %7 = vector.broadcast %c32_i32_0 : i32 to vector<896x28xi32>
    %8 = arith.cmpi slt, %4, %7 : vector<896x28xi32>
    %9 = arith.andi %6, %8 : vector<896x28xi1>
    %10 = arith.extui %9 : vector<896x28xi1> to vector<896x28xi32>
    %11 = arith.sitofp %10 : vector<896x28xi32> to vector<896x28xf32>
    %c0 = arith.constant 0 : index
    %c0_1 = arith.constant 0 : index
    %12 = vector.load %arg4[%c0, %c0_1] : memref<896x28xf32, #tpu.memory_space<vmem>>, vector<896x28xf32>
    tpu.vector_store %arg4[%c0, %c0_1], %11 {strides = array<i32>} : memref<896x28xf32, #tpu.memory_space<vmem>>, vector<896x28xf32>,
    %c0_2 = arith.constant 0 : index
    %c0_3 = arith.constant 0 : index
    %13 = vector.load %arg1[%c0_2, %c0_3] : memref<8x256xf32, #tpu.memory_space<vmem>>, vector<8x256xf32>
    %14 = vector.extract_strided_slice %13 {offsets = [0, 0], sizes = [8, 32], strides = [1, 1]} : vector<8x256xf32> to vector<8x32xf32>
    %15 = vector.extract_strided_slice %13 {offsets = [0, 32], sizes = [8, 224], strides = [1, 1]} : vector<8x256xf32> to vector<8x224xf32>
    %16 = tpu.concatenate %14, %14, %14, %14, %14, %14, %14 in 1 : vector<8x32xf32>, vector<8x32xf32>, vector<8x32xf32>, vector<8x32xf32>, vector<8x32xf32>, vector<8x32xf32>, vector<8x32xf32> -> vector<8x224xf32>
    %17 = arith.mulf %16, %15 : vector<8x224xf32>
    %c0_4 = arith.constant 0 : index
    %c0_5 = arith.constant 0 : index
    %18 = vector.load %arg3[%c0_4, %c0_5] : memref<8x896xf32, #tpu.memory_space<vmem>>, vector<8x224xf32>
    tpu.vector_store %arg3[%c0_4, %c0_5], %17 {strides = array<i32>} : memref<8x896xf32, #tpu.memory_space<vmem>>, vector<8x224xf32>,
    %19 = vector.extract_strided_slice %13 {offsets = [0, 32], sizes = [8, 32], strides = [1, 1]} : vector<8x256xf32> to vector<8x32xf32>
    %20 = vector.extract_strided_slice %13 {offsets = [0, 64], sizes = [8, 192], strides = [1, 1]} : vector<8x256xf32> to vector<8x192xf32>
    %21 = tpu.concatenate %19, %19, %19, %19, %19, %19 in 1 : vector<8x32xf32>, vector<8x32xf32>, vector<8x32xf32>, vector<8x32xf32>, vector<8x32xf32>, vector<8x32xf32> -> vector<8x192xf32>
    %22 = arith.mulf %21, %20 : vector<8x192xf32>
    %c0_6 = arith.constant 0 : index
    %c224 = arith.constant 224 : index
    %23 = vector.load %arg3[%c0_6, %c224] : memref<8x896xf32, #tpu.memory_space<vmem>>, vector<8x192xf32>
    tpu.vector_store %arg3[%c0_6, %c224], %22 {strides = array<i32>} : memref<8x896xf32, #tpu.memory_space<vmem>>, vector<8x192xf32>,
    %24 = vector.extract_strided_slice %13 {offsets = [0, 64], sizes = [8, 32], strides = [1, 1]} : vector<8x256xf32> to vector<8x32xf32>
    %25 = vector.extract_strided_slice %13 {offsets = [0, 96], sizes = [8, 160], strides = [1, 1]} : vector<8x256xf32> to vector<8x160xf32>
    %26 = tpu.concatenate %24, %24, %24, %24, %24 in 1 : vector<8x32xf32>, vector<8x32xf32>, vector<8x32xf32>, vector<8x32xf32>, vector<8x32xf32> -> vector<8x160xf32>
    %27 = arith.mulf %26, %25 : vector<8x160xf32>
    %c0_7 = arith.constant 0 : index
    %c416 = arith.constant 416 : index
    %28 = vector.load %arg3[%c0_7, %c416] : memref<8x896xf32, #tpu.memory_space<vmem>>, vector<8x160xf32>
    tpu.vector_store %arg3[%c0_7, %c416], %27 {strides = array<i32>} : memref<8x896xf32, #tpu.memory_space<vmem>>, vector<8x160xf32>,
    %29 = vector.extract_strided_slice %13 {offsets = [0, 96], sizes = [8, 32], strides = [1, 1]} : vector<8x256xf32> to vector<8x32xf32>
    %30 = vector.extract_strided_slice %13 {offsets = [0, 128], sizes = [8, 128], strides = [1, 1]} : vector<8x256xf32> to vector<8x128xf32>
    %31 = tpu.concatenate %29, %29, %29, %29 in 1 : vector<8x32xf32>, vector<8x32xf32>, vector<8x32xf32>, vector<8x32xf32> -> vector<8x128xf32>
    %32 = arith.mulf %31, %30 : vector<8x128xf32>
    %c0_8 = arith.constant 0 : index
    %c576 = arith.constant 576 : index
    %33 = vector.load %arg3[%c0_8, %c576] : memref<8x896xf32, #tpu.memory_space<vmem>>, vector<8x128xf32>
    tpu.vector_store %arg3[%c0_8, %c576], %32 {strides = array<i32>} : memref<8x896xf32, #tpu.memory_space<vmem>>, vector<8x128xf32>,
    %34 = vector.extract_strided_slice %13 {offsets = [0, 128], sizes = [8, 32], strides = [1, 1]} : vector<8x256xf32> to vector<8x32xf32>
    %35 = vector.extract_strided_slice %13 {offsets = [0, 160], sizes = [8, 96], strides = [1, 1]} : vector<8x256xf32> to vector<8x96xf32>
    %36 = tpu.concatenate %34, %34, %34 in 1 : vector<8x32xf32>, vector<8x32xf32>, vector<8x32xf32> -> vector<8x96xf32>
    %37 = arith.mulf %36, %35 : vector<8x96xf32>
    %c0_9 = arith.constant 0 : index
    %c704 = arith.constant 704 : index
    %38 = vector.load %arg3[%c0_9, %c704] : memref<8x896xf32, #tpu.memory_space<vmem>>, vector<8x96xf32>
    tpu.vector_store %arg3[%c0_9, %c704], %37 {strides = array<i32>} : memref<8x896xf32, #tpu.memory_space<vmem>>, vector<8x96xf32>,
    %39 = vector.extract_strided_slice %13 {offsets = [0, 160], sizes = [8, 32], strides = [1, 1]} : vector<8x256xf32> to vector<8x32xf32>
    %40 = vector.extract_strided_slice %13 {offsets = [0, 192], sizes = [8, 64], strides = [1, 1]} : vector<8x256xf32> to vector<8x64xf32>
    %41 = tpu.concatenate %39, %39 in 1 : vector<8x32xf32>, vector<8x32xf32> -> vector<8x64xf32>
    %42 = arith.mulf %41, %40 : vector<8x64xf32>
    %c0_10 = arith.constant 0 : index
    %c800 = arith.constant 800 : index
    %43 = vector.load %arg3[%c0_10, %c800] : memref<8x896xf32, #tpu.memory_space<vmem>>, vector<8x64xf32>
    tpu.vector_store %arg3[%c0_10, %c800], %42 {strides = array<i32>} : memref<8x896xf32, #tpu.memory_space<vmem>>, vector<8x64xf32>,
    %44 = vector.extract_strided_slice %13 {offsets = [0, 192], sizes = [8, 32], strides = [1, 1]} : vector<8x256xf32> to vector<8x32xf32>
    %45 = vector.extract_strided_slice %13 {offsets = [0, 224], sizes = [8, 32], strides = [1, 1]} : vector<8x256xf32> to vector<8x32xf32>
    %46 = arith.mulf %44, %45 : vector<8x32xf32>
    %c0_11 = arith.constant 0 : index
    %c864 = arith.constant 864 : index
    %47 = vector.load %arg3[%c0_11, %c864] : memref<8x896xf32, #tpu.memory_space<vmem>>, vector<8x32xf32>
    tpu.vector_store %arg3[%c0_11, %c864], %46 {strides = array<i32>} : memref<8x896xf32, #tpu.memory_space<vmem>>, vector<8x32xf32>,
    %c0_12 = arith.constant 0 : index
    %c0_13 = arith.constant 0 : index
    %48 = vector.load %arg3[%c0_12, %c0_13] : memref<8x896xf32, #tpu.memory_space<vmem>>, vector<8x896xf32>
    %c0_14 = arith.constant 0 : index
    %c0_15 = arith.constant 0 : index
    %49 = vector.load %arg4[%c0_14, %c0_15] : memref<896x28xf32, #tpu.memory_space<vmem>>, vector<896x28xf32>
    %cst = arith.constant dense<0.000000e+00> : vector<8x28xf32>
    %50 = tpu.matmul %48, %49, %cst {dimension_numbers = #tpu.dot_dimension_numbers<[1], [0], [0], [1], [0, 0, 1, 1], [], []>} : vector<8x896xf32>, vector<896x28xf32>, vector<8x28xf32> -> vector<8x28xf32>
    %c0_16 = arith.constant 0 : index
    %c0_17 = arith.constant 0 : index
    %51 = vector.load %arg2[%c0_16, %c0_17] : memref<8x28xf32, #tpu.memory_space<vmem>>, vector<8x28xf32>
    tpu.vector_store %arg2[%c0_16, %c0_17], %50 {strides = array<i32>} : memref<8x28xf32, #tpu.memory_space<vmem>>, vector<8x28xf32>,
    return
  }
  func.func @transform_0(%arg0: i32) -> (i32, i32) {
    %c0_i32 = arith.constant 0 : i32
    %c0_i32_0 = arith.constant 0 : i32
    return %arg0, %c0_i32 : i32, i32
  }
  func.func @transform_1(%arg0: i32) -> (i32, i32) {
    %c0_i32 = arith.constant 0 : i32
    %c0_i32_0 = arith.constant 0 : i32
    return %arg0, %c0_i32 : i32, i32
  }
}

</mosaic_0001>

<bundles_post_ra>
// kernel: tpu_custom_call.1
= control target key start
LH: loop header
LB: loop body
LE: loop exit
PB: predicated region body
PF: predicated region fallthrough
CT: control target
= control target key end

     0   :  { %6 = vsyncpa [#allocation5], 0  ;;  %s2475_s0 = inlined_call_operand.hbm [shape: f32[8,256], index: 0, kind: input, shape index: {}]   ;;  %s2476_s1 = inlined_call_operand.hbm [shape: f32[8,28], index: 1, kind: output, shape index: {}]  }
   0x1   :  { %7 = vsyncpa [#allocation6], 0  ;;  %s1892_s6 = smov [#allocation4]   ;;  %s1844_s10 = scalar_lea.hbm %s2475_s0, 256 }
   0x2   :  { %s14_s7 = sshll.u32 %s1892_s6, 4  ;;  %p1845_p0 = scmp.ne.s32.totalorder %s2475_s0, %s1844_s10  ;;  %s15_s7 = int_to_ptr.vmem [resolvable:$true] %s14_s7 }
   0x3   :  { %p1848_p1 = scmp.lt.u32.totalorder %s1844_s10, %s2475_s0 }
   0x5   :  { %p1850_p2 = pnand %p1848_p1, %p1845_p0 }
   0x7   :  { %1853 = shalt.err (!%p1850_p2)
}
   0x8   :  { %s1854_s15 = scalar_lea.vmem %s15_s7, 256  ;;  %p1859_p4 = scmp.lt.s32.totalorder %s15_s7, %s15_s7 }
   0x9   :  { %p1855_p3 = scmp.ne.s32.totalorder %s15_s7, %s1854_s15  ;;  %p1860_p5 = scmp.lt.s32.totalorder %s1854_s15, %s1854_s15 }
   0xb   :  { %p1861_p6 = por %p1860_p5, %p1859_p4 }
   0xd   :  { %p1862_p7 = pnand %p1861_p6, %p1855_p3 }
   0xf   :  { %1865 = shalt.err (!%p1862_p7)
}
  0x10   :  { %17 = dma.hbm_to_vmem [thread:$0]  %s2475_s0, 256, %s15_s7, [#allocation5]  }
  0x11   :  { %1888 = dma.done.wait [#allocation5], 256  }
  0x12   :  { %1889 = vsyncadd [#allocation5], 4294967040  ;;  %v922_v0 = vld [vmem:[#allocation4] sm:$0xff]  ;;  %s1893_s18 = smov 64   ;;  %s1894_s19 = smov 96   ;;  %v923_v1 = vld [vmem:[#allocation4 + $0x8] sm:$0xff]  ;;  %v21_v2 = vlaneseq }
  0x13   :  { %928 = vrot.lane.b32.xlu1 %v922_v0, %s1893_s18  ;;  %931 = vrot.lane.b32.xlu0 %v922_v0, %s1894_s19  ;;  %s1895_s20 = smov 32   ;;  %vm809_vm0 = vcmask 228352   ;;  %v1896_v21 = vmov 0.0   ;;  %s1899_s0 = smov [#allocation7]  }
  0x14   :  { %v1928_v3 = vshrl.u32 %v21_v2, 7  ;;  %v135_v4 = vand.u32 127, %v21_v2  ;;  %s1436_s21 = sshll.u32 %s1899_s0, 4  ;;  %s1437_s21 = int_to_ptr.vmem [resolvable:$true] %s1436_s21 }
  0x15   :  { %s1866_s22 = scalar_lea.vmem %s1437_s21, 128  ;;  %p1871_p9 = scmp.lt.s32.totalorder %s1437_s21, %s1437_s21 }
  0x16   :  { %v38_v5 = vadd.s32 128, %v1928_v3  ;;  %v39_v6 = vadd.s32 136, %v1928_v3  ;;  %v1932_v7 = vmul.u32 32, %v135_v4  ;;  %v23_v8 = vadd.s32 8, %v1928_v3  ;;  %p1867_p8 = scmp.ne.s32.totalorder %s1437_s21, %s1866_s22  ;;  %p1872_p10 = scmp.lt.s32.totalorder %s1866_s22, %s1866_s22 }
  0x17   :  { %953 = vrot.lane.b32.xlu1 %v923_v1, %s1893_s18  ;;  %925 = vrot.lane.b32.xlu0 %v922_v0, %s1895_s20  ;;  %v40_v9 = vadd.s32 144, %v1928_v3  ;;  %v41_v10 = vadd.s32 152, %v1928_v3  ;;  %v70_v11 = vadd.s32 384, %v1928_v3  ;;  %v71_v12 = vadd.s32 392, %v1928_v3 }
  0x18   :  { %v153_v13 = vsub.s32 %v38_v5, %v1932_v7  ;;  %v154_v14 = vsub.s32 %v39_v6, %v1932_v7  ;;  %v137_v15 = vsub.s32 %v1928_v3, %v1932_v7  ;;  %v138_v16 = vsub.s32 %v23_v8, %v1932_v7  ;;  %p1873_p11 = por %p1872_p10, %p1871_p9 }
  0x19   :  { %v155_v17 = vsub.s32 %v40_v9, %v1932_v7  ;;  %v156_v18 = vsub.s32 %v41_v10, %v1932_v7  ;;  %v185_v19 = vsub.s32 %v70_v11, %v1932_v7  ;;  %v186_v20 = vsub.s32 %v71_v12, %v1932_v7 }
  0x1a   :  { %vm265_vm1 = vcmp.ge.s32.totalorder %v153_v13, 0  ;;  %vm266_vm2 = vcmp.ge.s32.totalorder %v154_v14, 0  ;;  %vm377_vm3 = vcmp.lt.s32.totalorder %v153_v13, 32  ;;  %vm378_vm4 = vcmp.lt.s32.totalorder %v154_v14, 32  ;;  %p1874_p12 = pnand %p1873_p11, %p1867_p8 }
  0x1b   :  { %941 = vrot.lane.b32.xlu1 %v923_v1, %s1894_s19  ;;  %977 = vrot.lane.b32.xlu0 %v923_v1, %s1895_s20  ;;  %vm489_vm5 = vmand %vm265_vm1, %vm377_vm3  ;;  %vm249_vm6 = vcmp.ge.s32.totalorder %v137_v15, 0  ;;  %vm250_vm7 = vcmp.ge.s32.totalorder %v138_v16, 0  ;;  %vm361_vm8 = vcmp.lt.s32.totalorder %v137_v15, 32  ;;  %vm362_vm9 = vcmp.lt.s32.totalorder %v138_v16, 32 }
  0x1c   :  { %vm490_vm10 = vmand %vm266_vm2, %vm378_vm4  ;;  %v1461_v22 = vsel %vm489_vm5, 1.0, %v1896_v21  ;;  %vm267_vm11 = vcmp.ge.s32.totalorder %v155_v17, 0  ;;  %vm268_vm12 = vcmp.ge.s32.totalorder %v156_v18, 0  ;;  %vm379_vm13 = vcmp.lt.s32.totalorder %v155_v17, 32 }
  0x1d   :  { %v1462_v23 = vsel %vm490_vm10, 1.0, %v1896_v21  ;;  %826 = vst.msk [vmem:[#allocation3 + $0x80] sm:$0xff] %vm809_vm0, %v1461_v22  ;;  %vm473_vm14 = vmand %vm249_vm6, %vm361_vm8  ;;  %vm380_vm15 = vcmp.lt.s32.totalorder %v156_v18, 32  ;;  %vm297_vm1 = vcmp.ge.s32.totalorder %v185_v19, 0  ;;  %vm298_vm3 = vcmp.ge.s32.totalorder %v186_v20, 0 }
  0x1e   :  { %827 = vst.msk [vmem:[#allocation3 + $0x88] sm:$0xff] %vm809_vm0, %v1462_v23  ;;  %vm474_vm2 = vmand %vm250_vm7, %vm362_vm9  ;;  %v1445_v24 = vsel %vm473_vm14, 1.0, %v1896_v21  ;;  %vm409_vm4 = vcmp.lt.s32.totalorder %v185_v19, 32  ;;  %vm410_vm5 = vcmp.lt.s32.totalorder %v186_v20, 32  ;;  %v24_v25 = vadd.s32 16, %v1928_v3 }
  0x1f   :  { %v1446_v26 = vsel %vm474_vm2, 1.0, %v1896_v21  ;;  %810 = vst.msk [vmem:[#allocation3] sm:$0xff] %vm809_vm0, %v1445_v24  ;;  %vm491_vm6 = vmand %vm267_vm11, %vm379_vm13  ;;  %v25_v27 = vadd.s32 24, %v1928_v3  ;;  %v54_v28 = vadd.s32 256, %v1928_v3  ;;  %v55_v29 = vadd.s32 264, %v1928_v3 }
  0x20   :  { %811 = vst.msk [vmem:[#allocation3 + $0x8] sm:$0xff] %vm809_vm0, %v1446_v26  ;;  %vm492_vm7 = vmand %vm268_vm12, %vm380_vm15  ;;  %v1463_v30 = vsel %vm491_vm6, 1.0, %v1896_v21  ;;  %v139_v31 = vsub.s32 %v24_v25, %v1932_v7  ;;  %v42_v32 = vadd.s32 160, %v1928_v3  ;;  %v43_v33 = vadd.s32 168, %v1928_v3 }
  0x21   :  { %v1464_v34 = vsel %vm492_vm7, 1.0, %v1896_v21  ;;  %828 = vst.msk [vmem:[#allocation3 + $0x90] sm:$0xff] %vm809_vm0, %v1463_v30  ;;  %vm521_vm8 = vmand %vm297_vm1, %vm409_vm4  ;;  %v140_v35 = vsub.s32 %v25_v27, %v1932_v7  ;;  %v169_v36 = vsub.s32 %v54_v28, %v1932_v7  ;;  %v170_v37 = vsub.s32 %v55_v29, %v1932_v7 }
  0x22   :  { %829 = vst.msk [vmem:[#allocation3 + $0x98] sm:$0xff] %vm809_vm0, %v1464_v34  ;;  %vm522_vm9 = vmand %vm298_vm3, %vm410_vm5  ;;  %v1493_v38 = vsel %vm521_vm8, 1.0, %v1896_v21  ;;  %vm251_vm10 = vcmp.ge.s32.totalorder %v139_v31, 0  ;;  %vm363_vm11 = vcmp.lt.s32.totalorder %v139_v31, 32  ;;  %v157_v39 = vsub.s32 %v42_v32, %v1932_v7 }
  0x23   :  { %v1494_v40 = vsel %vm522_vm9, 1.0, %v1896_v21  ;;  %858 = vst.msk [vmem:[#allocation3 + $0x180] sm:$0xff] %vm809_vm0, %v1493_v38  ;;  %vm252_vm12 = vcmp.ge.s32.totalorder %v140_v35, 0  ;;  %vm364_vm13 = vcmp.lt.s32.totalorder %v140_v35, 32  ;;  %vm475_vm14 = vmand %vm251_vm10, %vm363_vm11  ;;  %vm281_vm15 = vcmp.ge.s32.totalorder %v169_v36, 0 }
  0x24   :  { %v1053_v41 = vld [vmem:[#allocation3 + $0x80] sm:$0xff]  ;;  %859 = vst.msk [vmem:[#allocation3 + $0x188] sm:$0xff] %vm809_vm0, %v1494_v40  ;;  %vm476_vm1 = vmand %vm252_vm12, %vm364_vm13  ;;  %v1447_v42 = vsel %vm475_vm14, 1.0, %v1896_v21  ;;  %vm282_vm3 = vcmp.ge.s32.totalorder %v170_v37, 0  ;;  %vm393_vm2 = vcmp.lt.s32.totalorder %v169_v36, 32  ;;  %vm394_vm4 = vcmp.lt.s32.totalorder %v170_v37, 32 }
  0x25   :  { %v1054_v43 = vld [vmem:[#allocation3 + $0x88] sm:$0xff]  ;;  %v1448_v44 = vsel %vm476_vm1, 1.0, %v1896_v21  ;;  %812 = vst.msk [vmem:[#allocation3 + $0x10] sm:$0xff] %vm809_vm0, %v1447_v42  ;;  %vm505_vm5 = vmand %vm281_vm15, %vm393_vm2  ;;  %v158_v45 = vsub.s32 %v43_v33, %v1932_v7  ;;  %vm269_vm6 = vcmp.ge.s32.totalorder %v157_v39, 0  ;;  %vm381_vm7 = vcmp.lt.s32.totalorder %v157_v39, 32 }
  0x26   :  { %v1714_v46 = vpack.c.bf16 %v1054_v43, %v1053_v41  ;;  %v1037_v47 = vld [vmem:[#allocation3] sm:$0xff]  ;;  %813 = vst.msk [vmem:[#allocation3 + $0x18] sm:$0xff] %vm809_vm0, %v1448_v44  ;;  %vm506_vm8 = vmand %vm282_vm3, %vm394_vm4  ;;  %v1477_v48 = vsel %vm505_vm5, 1.0, %v1896_v21  ;;  %v72_v49 = vadd.s32 400, %v1928_v3  ;;  %v73_v50 = vadd.s32 408, %v1928_v3 }
  0x27   :  { %v1038_v51 = vld [vmem:[#allocation3 + $0x8] sm:$0xff]  ;;  %v1478_v52 = vsel %vm506_vm8, 1.0, %v1896_v21  ;;  %842 = vst.msk [vmem:[#allocation3 + $0x100] sm:$0xff] %vm809_vm0, %v1477_v48  ;;  %vm270_vm9 = vcmp.ge.s32.totalorder %v158_v45, 0  ;;  %vm382_vm10 = vcmp.lt.s32.totalorder %v158_v45, 32  ;;  %vm493_vm11 = vmand %vm269_vm6, %vm381_vm7  ;;  %v26_v53 = vadd.s32 32, %v1928_v3 }
  0x28   :  { %1715 = vmatprep.subr.bf16.mxu0 %v1714_v46  ;;  %v1716_v54 = vpack.c.bf16 %v1038_v51, %v1037_v47  ;;  %v1055_v55 = vld [vmem:[#allocation3 + $0x90] sm:$0xff]  ;;  %843 = vst.msk [vmem:[#allocation3 + $0x108] sm:$0xff] %vm809_vm0, %v1478_v52  ;;  %vm494_vm12 = vmand %vm270_vm9, %vm382_vm10  ;;  %v1465_v56 = vsel %vm493_vm11, 1.0, %v1896_v21  ;;  %v187_v57 = vsub.s32 %v72_v49, %v1932_v7  ;;  %v188_v58 = vsub.s32 %v73_v50, %v1932_v7 }
  0x29   :  { %v1056_v59 = vld [vmem:[#allocation3 + $0x98] sm:$0xff]  ;;  %v1466_v60 = vsel %vm494_vm12, 1.0, %v1896_v21  ;;  %830 = vst.msk [vmem:[#allocation3 + $0xa0] sm:$0xff] %vm809_vm0, %v1465_v56  ;;  %v27_v61 = vadd.s32 40, %v1928_v3  ;;  %v141_v62 = vsub.s32 %v26_v53, %v1932_v7  ;;  %v56_v63 = vadd.s32 272, %v1928_v3 }
  0x2a   :  { %1717 = vmatpush3.bf16.msra.mxu0 %v1716_v54  ;;  %v1718_v0 = vpack.c.bf16 %v1056_v59, %v1055_v55  ;;  %v1085_v1 = vld [vmem:[#allocation3 + $0x180] sm:$0xff]  ;;  %831 = vst.msk [vmem:[#allocation3 + $0xa8] sm:$0xff] %vm809_vm0, %v1466_v60  ;;  %vm299_vm13 = vcmp.ge.s32.totalorder %v187_v57, 0  ;;  %vm300_vm14 = vcmp.ge.s32.totalorder %v188_v58, 0  ;;  %vm411_vm15 = vcmp.lt.s32.totalorder %v187_v57, 32 }
  0x2b   :  { %v1086_v2 = vld [vmem:[#allocation3 + $0x188] sm:$0xff]  ;;  %vm412_vm1 = vcmp.lt.s32.totalorder %v188_v58, 32  ;;  %vm523_vm3 = vmand %vm299_vm13, %vm411_vm15  ;;  %v142_v4 = vsub.s32 %v27_v61, %v1932_v7  ;;  %vm253_vm2 = vcmp.ge.s32.totalorder %v141_v62, 0  ;;  %vm365_vm4 = vcmp.lt.s32.totalorder %v141_v62, 32 }
  0x2c   :  { %1719 = vmatprep.subr.bf16.mxu0 %v1718_v0  ;;  %v1746_v5 = vpack.c.bf16 %v1086_v2, %v1085_v1  ;;  %v1039_v6 = vld [vmem:[#allocation3 + $0x10] sm:$0xff]  ;;  %vm524_vm5 = vmand %vm300_vm14, %vm412_vm1  ;;  %v1495_v8 = vsel %vm523_vm3, 1.0, %v1896_v21  ;;  %v57_v9 = vadd.s32 280, %v1928_v3  ;;  %v171_v10 = vsub.s32 %v56_v63, %v1932_v7 }
  0x2d   :  { %v1040_v11 = vld [vmem:[#allocation3 + $0x18] sm:$0xff]  ;;  %v1496_v12 = vsel %vm524_vm5, 1.0, %v1896_v21  ;;  %860 = vst.msk [vmem:[#allocation3 + $0x190] sm:$0xff] %vm809_vm0, %v1495_v8  ;;  %vm254_vm6 = vcmp.ge.s32.totalorder %v142_v4, 0  ;;  %vm366_vm7 = vcmp.lt.s32.totalorder %v142_v4, 32  ;;  %vm477_vm8 = vmand %vm253_vm2, %vm365_vm4  ;;  %v44_v13 = vadd.s32 176, %v1928_v3 }
  0x2e   :  { %1747 = vmatprep.subr.bf16.mxu1 %v1746_v5  ;;  %v1720_v14 = vpack.c.bf16 %v1040_v11, %v1039_v6  ;;  %v1069_v15 = vld [vmem:[#allocation3 + $0x100] sm:$0xff]  ;;  %861 = vst.msk [vmem:[#allocation3 + $0x198] sm:$0xff] %vm809_vm0, %v1496_v12  ;;  %vm478_vm9 = vmand %vm254_vm6, %vm366_vm7  ;;  %v1449_v16 = vsel %vm477_vm8, 1.0, %v1896_v21  ;;  %v172_v17 = vsub.s32 %v57_v9, %v1932_v7  ;;  %vm283_vm10 = vcmp.ge.s32.totalorder %v171_v10, 0 }
  0x2f   :  { %v1070_v18 = vld [vmem:[#allocation3 + $0x108] sm:$0xff]  ;;  %v1450_v19 = vsel %vm478_vm9, 1.0, %v1896_v21  ;;  %814 = vst.msk [vmem:[#allocation3 + $0x20] sm:$0xff] %vm809_vm0, %v1449_v16  ;;  %vm395_vm11 = vcmp.lt.s32.totalorder %v171_v10, 32  ;;  %v45_v20 = vadd.s32 184, %v1928_v3  ;;  %v159_v22 = vsub.s32 %v44_v13, %v1932_v7 }
  0x30   :  { %1721 = vmatpush3.bf16.msra.mxu0 %v1720_v14  ;;  %v1748_v23 = vpack.c.bf16 %v1070_v18, %v1069_v15  ;;  %v1057_v24 = vld [vmem:[#allocation3 + $0xa0] sm:$0xff]  ;;  %815 = vst.msk [vmem:[#allocation3 + $0x28] sm:$0xff] %vm809_vm0, %v1450_v19  ;;  %vm284_vm12 = vcmp.ge.s32.totalorder %v172_v17, 0  ;;  %vm396_vm13 = vcmp.lt.s32.totalorder %v172_v17, 32  ;;  %vm507_vm14 = vmand %vm283_vm10, %vm395_vm11  ;;  %v74_v25 = vadd.s32 416, %v1928_v3 }
  0x31   :  { %v1058_v26 = vld [vmem:[#allocation3 + $0xa8] sm:$0xff]  ;;  %vm508_vm15 = vmand %vm284_vm12, %vm396_vm13  ;;  %v1479_v27 = vsel %vm507_vm14, 1.0, %v1896_v21  ;;  %v160_v28 = vsub.s32 %v45_v20, %v1932_v7  ;;  %vm271_vm1 = vcmp.ge.s32.totalorder %v159_v22, 0  ;;  %vm383_vm3 = vcmp.lt.s32.totalorder %v159_v22, 32 }
  0x32   :  { %1749 = vmatpush3.bf16.msra.mxu1 %v1748_v23  ;;  %v1722_v29 = vpack.c.bf16 %v1058_v26, %v1057_v24  ;;  %v1480_v30 = vsel %vm508_vm15, 1.0, %v1896_v21  ;;  %844 = vst.msk [vmem:[#allocation3 + $0x110] sm:$0xff] %vm809_vm0, %v1479_v27  ;;  %vm495_vm2 = vmand %vm271_vm1, %vm383_vm3  ;;  %v75_v31 = vadd.s32 424, %v1928_v3  ;;  %v189_v32 = vsub.s32 %v74_v25, %v1932_v7 }
  0x33   :  { %845 = vst.msk [vmem:[#allocation3 + $0x118] sm:$0xff] %vm809_vm0, %v1480_v30  ;;  %vm272_vm4 = vcmp.ge.s32.totalorder %v160_v28, 0  ;;  %vm384_vm5 = vcmp.lt.s32.totalorder %v160_v28, 32  ;;  %v1467_v33 = vsel %vm495_vm2, 1.0, %v1896_v21  ;;  %v28_v34 = vadd.s32 48, %v1928_v3 }
  0x34   :  { %1723 = vmatprep.subr.bf16.mxu0 %v1722_v29  ;;  %v1087_v35 = vld [vmem:[#allocation3 + $0x190] sm:$0xff]  ;;  %vm496_vm6 = vmand %vm272_vm4, %vm384_vm5  ;;  %832 = vst.msk [vmem:[#allocation3 + $0xb0] sm:$0xff] %vm809_vm0, %v1467_v33  ;;  %v190_v36 = vsub.s32 %v75_v31, %v1932_v7  ;;  %vm301_vm7 = vcmp.ge.s32.totalorder %v189_v32, 0  ;;  %vm413_vm8 = vcmp.lt.s32.totalorder %v189_v32, 32  ;;  %v29_v37 = vadd.s32 56, %v1928_v3 }
  0x35   :  { %v1088_v38 = vld [vmem:[#allocation3 + $0x198] sm:$0xff]  ;;  %v1468_v39 = vsel %vm496_vm6, 1.0, %v1896_v21  ;;  %vm525_vm9 = vmand %vm301_vm7, %vm413_vm8  ;;  %v143_v40 = vsub.s32 %v28_v34, %v1932_v7  ;;  %v58_v41 = vadd.s32 288, %v1928_v3  ;;  %v59_v42 = vadd.s32 296, %v1928_v3 }
  0x36   :  { %v1750_v43 = vpack.c.bf16 %v1088_v38, %v1087_v35  ;;  %v1041_v44 = vld [vmem:[#allocation3 + $0x20] sm:$0xff]  ;;  %833 = vst.msk [vmem:[#allocation3 + $0xb8] sm:$0xff] %vm809_vm0, %v1468_v39  ;;  %vm302_vm10 = vcmp.ge.s32.totalorder %v190_v36, 0  ;;  %vm414_vm11 = vcmp.lt.s32.totalorder %v190_v36, 32  ;;  %v1497_v45 = vsel %vm525_vm9, 1.0, %v1896_v21 }
  0x37   :  { %v1042_v46 = vld [vmem:[#allocation3 + $0x28] sm:$0xff]  ;;  %vm526_vm12 = vmand %vm302_vm10, %vm414_vm11  ;;  %862 = vst.msk [vmem:[#allocation3 + $0x1a0] sm:$0xff] %vm809_vm0, %v1497_v45  ;;  %v144_v47 = vsub.s32 %v29_v37, %v1932_v7  ;;  %vm255_vm13 = vcmp.ge.s32.totalorder %v143_v40, 0  ;;  %vm367_vm14 = vcmp.lt.s32.totalorder %v143_v40, 32  ;;  %v173_v48 = vsub.s32 %v58_v41, %v1932_v7 }
  0x38   :  { %1751 = vmatprep.subr.bf16.mxu1 %v1750_v43  ;;  %v1724_v49 = vpack.c.bf16 %v1042_v46, %v1041_v44  ;;  %v1498_v50 = vsel %vm526_vm12, 1.0, %v1896_v21  ;;  %vm479_vm15 = vmand %vm255_vm13, %vm367_vm14  ;;  %v174_v51 = vsub.s32 %v59_v42, %v1932_v7  ;;  %v46_v52 = vadd.s32 192, %v1928_v3 }
  0x39   :  { %v1071_v53 = vld [vmem:[#allocation3 + $0x110] sm:$0xff]  ;;  %863 = vst.msk [vmem:[#allocation3 + $0x1a8] sm:$0xff] %vm809_vm0, %v1498_v50  ;;  %vm256_vm1 = vcmp.ge.s32.totalorder %v144_v47, 0  ;;  %vm368_vm3 = vcmp.lt.s32.totalorder %v144_v47, 32  ;;  %v1451_v54 = vsel %vm479_vm15, 1.0, %v1896_v21  ;;  %vm285_vm2 = vcmp.ge.s32.totalorder %v173_v48, 0 }
  0x3a   :  { %1725 = vmatpush3.bf16.msra.mxu0 %v1724_v49  ;;  %v1072_v55 = vld [vmem:[#allocation3 + $0x118] sm:$0xff]  ;;  %vm480_vm4 = vmand %vm256_vm1, %vm368_vm3  ;;  %816 = vst.msk [vmem:[#allocation3 + $0x30] sm:$0xff] %vm809_vm0, %v1451_v54  ;;  %vm286_vm5 = vcmp.ge.s32.totalorder %v174_v51, 0  ;;  %vm397_vm6 = vcmp.lt.s32.totalorder %v173_v48, 32  ;;  %vm398_vm7 = vcmp.lt.s32.totalorder %v174_v51, 32  ;;  %v47_v56 = vadd.s32 200, %v1928_v3 }
  0x3b   :  { %v1752_v57 = vpack.c.bf16 %v1072_v55, %v1071_v53  ;;  %v1059_v58 = vld [vmem:[#allocation3 + $0xb0] sm:$0xff]  ;;  %v1452_v59 = vsel %vm480_vm4, 1.0, %v1896_v21  ;;  %vm509_vm8 = vmand %vm285_vm2, %vm397_vm6  ;;  %v161_v60 = vsub.s32 %v46_v52, %v1932_v7  ;;  %v76_v61 = vadd.s32 432, %v1928_v3 }
  0x3c   :  { %817 = vst.msk [vmem:[#allocation3 + $0x38] sm:$0xff] %vm809_vm0, %v1452_v59  ;;  %vm510_vm9 = vmand %vm286_vm5, %vm398_vm7  ;;  %v1481_v62 = vsel %vm509_vm8, 1.0, %v1896_v21  ;;  %v162_v63 = vsub.s32 %v47_v56, %v1932_v7  ;;  %v77_v0 = vadd.s32 440, %v1928_v3  ;;  %v30_v1 = vadd.s32 64, %v1928_v3 }
  0x3d   :  { %1753 = vmatpush3.bf16.msra.mxu1 %v1752_v57  ;;  %v1060_v2 = vld [vmem:[#allocation3 + $0xb8] sm:$0xff]  ;;  %v1482_v4 = vsel %vm510_vm9, 1.0, %v1896_v21  ;;  %846 = vst.msk [vmem:[#allocation3 + $0x120] sm:$0xff] %vm809_vm0, %v1481_v62  ;;  %vm273_vm10 = vcmp.ge.s32.totalorder %v161_v60, 0  ;;  %vm385_vm11 = vcmp.lt.s32.totalorder %v161_v60, 32  ;;  %v191_v5 = vsub.s32 %v76_v61, %v1932_v7 }
  0x3e   :  { %v1726_v6 = vpack.c.bf16 %v1060_v2, %v1059_v58  ;;  %v1089_v8 = vld [vmem:[#allocation3 + $0x1a0] sm:$0xff]  ;;  %847 = vst.msk [vmem:[#allocation3 + $0x128] sm:$0xff] %vm809_vm0, %v1482_v4  ;;  %vm274_vm12 = vcmp.ge.s32.totalorder %v162_v63, 0  ;;  %vm386_vm13 = vcmp.lt.s32.totalorder %v162_v63, 32  ;;  %vm497_vm14 = vmand %vm273_vm10, %vm385_vm11  ;;  %v192_v9 = vsub.s32 %v77_v0, %v1932_v7 }
  0x3f   :  { %vm498_vm15 = vmand %vm274_vm12, %vm386_vm13  ;;  %v1469_v10 = vsel %vm497_vm14, 1.0, %v1896_v21  ;;  %vm303_vm1 = vcmp.ge.s32.totalorder %v191_v5, 0  ;;  %vm415_vm3 = vcmp.lt.s32.totalorder %v191_v5, 32  ;;  %v31_v11 = vadd.s32 72, %v1928_v3 }
  0x40   :  { %1727 = vmatprep.subr.bf16.mxu0 %v1726_v6  ;;  %v1090_v12 = vld [vmem:[#allocation3 + $0x1a8] sm:$0xff]  ;;  %v1470_v13 = vsel %vm498_vm15, 1.0, %v1896_v21  ;;  %834 = vst.msk [vmem:[#allocation3 + $0xc0] sm:$0xff] %vm809_vm0, %v1469_v10  ;;  %vm304_vm2 = vcmp.ge.s32.totalorder %v192_v9, 0  ;;  %vm416_vm4 = vcmp.lt.s32.totalorder %v192_v9, 32  ;;  %vm527_vm5 = vmand %vm303_vm1, %vm415_vm3  ;;  %v145_v14 = vsub.s32 %v30_v1, %v1932_v7 }
  0x41   :  { %v1754_v15 = vpack.c.bf16 %v1090_v12, %v1089_v8  ;;  %v1043_v16 = vld [vmem:[#allocation3 + $0x30] sm:$0xff]  ;;  %835 = vst.msk [vmem:[#allocation3 + $0xc8] sm:$0xff] %vm809_vm0, %v1470_v13  ;;  %vm528_vm6 = vmand %vm304_vm2, %vm416_vm4  ;;  %v1499_v17 = vsel %vm527_vm5, 1.0, %v1896_v21  ;;  %v146_v18 = vsub.s32 %v31_v11, %v1932_v7  ;;  %v60_v19 = vadd.s32 304, %v1928_v3 }
  0x42   :  { %v1500_v20 = vsel %vm528_vm6, 1.0, %v1896_v21  ;;  %864 = vst.msk [vmem:[#allocation3 + $0x1b0] sm:$0xff] %vm809_vm0, %v1499_v17  ;;  %vm257_vm7 = vcmp.ge.s32.totalorder %v145_v14, 0  ;;  %vm369_vm8 = vcmp.lt.s32.totalorder %v145_v14, 32  ;;  %v61_v22 = vadd.s32 312, %v1928_v3 }
  0x43   :  { %1755 = vmatprep.subr.bf16.mxu1 %v1754_v15  ;;  %v1044_v23 = vld [vmem:[#allocation3 + $0x38] sm:$0xff]  ;;  %865 = vst.msk [vmem:[#allocation3 + $0x1b8] sm:$0xff] %vm809_vm0, %v1500_v20  ;;  %vm258_vm9 = vcmp.ge.s32.totalorder %v146_v18, 0  ;;  %vm370_vm10 = vcmp.lt.s32.totalorder %v146_v18, 32  ;;  %vm481_vm11 = vmand %vm257_vm7, %vm369_vm8  ;;  %v175_v24 = vsub.s32 %v60_v19, %v1932_v7  ;;  %v48_v25 = vadd.s32 208, %v1928_v3 }
  0x44   :  { %v1728_v26 = vpack.c.bf16 %v1044_v23, %v1043_v16  ;;  %v1073_v27 = vld [vmem:[#allocation3 + $0x120] sm:$0xff]  ;;  %vm482_vm12 = vmand %vm258_vm9, %vm370_vm10  ;;  %v1453_v28 = vsel %vm481_vm11, 1.0, %v1896_v21  ;;  %v176_v29 = vsub.s32 %v61_v22, %v1932_v7  ;;  %v49_v30 = vadd.s32 216, %v1928_v3 }
  0x45   :  { %v1074_v31 = vld [vmem:[#allocation3 + $0x128] sm:$0xff]  ;;  %v1454_v32 = vsel %vm482_vm12, 1.0, %v1896_v21  ;;  %818 = vst.msk [vmem:[#allocation3 + $0x40] sm:$0xff] %vm809_vm0, %v1453_v28  ;;  %vm287_vm13 = vcmp.ge.s32.totalorder %v175_v24, 0  ;;  %vm399_vm14 = vcmp.lt.s32.totalorder %v175_v24, 32  ;;  %v163_v33 = vsub.s32 %v48_v25, %v1932_v7 }
  0x46   :  { %1729 = vmatpush3.bf16.msra.mxu0 %v1728_v26  ;;  %v1756_v34 = vpack.c.bf16 %v1074_v31, %v1073_v27  ;;  %819 = vst.msk [vmem:[#allocation3 + $0x48] sm:$0xff] %vm809_vm0, %v1454_v32  ;;  %vm288_vm15 = vcmp.ge.s32.totalorder %v176_v29, 0  ;;  %vm400_vm1 = vcmp.lt.s32.totalorder %v176_v29, 32  ;;  %vm511_vm3 = vmand %vm287_vm13, %vm399_vm14  ;;  %v164_v35 = vsub.s32 %v49_v30, %v1932_v7 }
  0x47   :  { %v1061_v36 = vld [vmem:[#allocation3 + $0xc0] sm:$0xff]  ;;  %vm512_vm2 = vmand %vm288_vm15, %vm400_vm1  ;;  %v1483_v37 = vsel %vm511_vm3, 1.0, %v1896_v21  ;;  %vm275_vm4 = vcmp.ge.s32.totalorder %v163_v33, 0  ;;  %vm387_vm5 = vcmp.lt.s32.totalorder %v163_v33, 32  ;;  %v78_v38 = vadd.s32 448, %v1928_v3 }
  0x48   :  { %1757 = vmatpush3.bf16.msra.mxu1 %v1756_v34  ;;  %v1062_v39 = vld [vmem:[#allocation3 + $0xc8] sm:$0xff]  ;;  %v1484_v40 = vsel %vm512_vm2, 1.0, %v1896_v21  ;;  %848 = vst.msk [vmem:[#allocation3 + $0x130] sm:$0xff] %vm809_vm0, %v1483_v37  ;;  %vm276_vm6 = vcmp.ge.s32.totalorder %v164_v35, 0  ;;  %vm388_vm7 = vcmp.lt.s32.totalorder %v164_v35, 32  ;;  %vm499_vm8 = vmand %vm275_vm4, %vm387_vm5  ;;  %v79_v41 = vadd.s32 456, %v1928_v3 }
  0x49   :  { %v1730_v42 = vpack.c.bf16 %v1062_v39, %v1061_v36  ;;  %v1091_v43 = vld [vmem:[#allocation3 + $0x1b0] sm:$0xff]  ;;  %849 = vst.msk [vmem:[#allocation3 + $0x138] sm:$0xff] %vm809_vm0, %v1484_v40  ;;  %vm500_vm9 = vmand %vm276_vm6, %vm388_vm7  ;;  %v1471_v44 = vsel %vm499_vm8, 1.0, %v1896_v21  ;;  %v193_v45 = vsub.s32 %v78_v38, %v1932_v7  ;;  %v32_v0 = vadd.s32 80, %v1928_v3 }
  0x4a   :  { %v1092_v46 = vld [vmem:[#allocation3 + $0x1b8] sm:$0xff]  ;;  %v1472_v47 = vsel %vm500_vm9, 1.0, %v1896_v21  ;;  %836 = vst.msk [vmem:[#allocation3 + $0xd0] sm:$0xff] %vm809_vm0, %v1471_v44  ;;  %v194_v48 = vsub.s32 %v79_v41, %v1932_v7  ;;  %v33_v1 = vadd.s32 88, %v1928_v3  ;;  %v62_v2 = vadd.s32 320, %v1928_v3 }
  0x4b   :  { %1731 = vmatprep.subr.bf16.mxu0 %v1730_v42  ;;  %v1758_v49 = vpack.c.bf16 %v1092_v46, %v1091_v43  ;;  %837 = vst.msk [vmem:[#allocation3 + $0xd8] sm:$0xff] %vm809_vm0, %v1472_v47  ;;  %vm305_vm10 = vcmp.ge.s32.totalorder %v193_v45, 0  ;;  %vm417_vm11 = vcmp.lt.s32.totalorder %v193_v45, 32  ;;  %v63_v4 = vadd.s32 328, %v1928_v3 }
  0x4c   :  { %v1045_v50 = vld [vmem:[#allocation3 + $0x40] sm:$0xff]  ;;  %vm306_vm12 = vcmp.ge.s32.totalorder %v194_v48, 0  ;;  %vm418_vm13 = vcmp.lt.s32.totalorder %v194_v48, 32  ;;  %vm529_vm14 = vmand %vm305_vm10, %vm417_vm11  ;;  %v147_v5 = vsub.s32 %v32_v0, %v1932_v7  ;;  %v148_v6 = vsub.s32 %v33_v1, %v1932_v7 }
  0x4d   :  { %1759 = vmatprep.subr.bf16.mxu1 %v1758_v49  ;;  %v1046_v51 = vld [vmem:[#allocation3 + $0x48] sm:$0xff]  ;;  %vm530_vm15 = vmand %vm306_vm12, %vm418_vm13  ;;  %v1501_v52 = vsel %vm529_vm14, 1.0, %v1896_v21  ;;  %v177_v8 = vsub.s32 %v62_v2, %v1932_v7  ;;  %v178_v9 = vsub.s32 %v63_v4, %v1932_v7  ;;  %v50_v10 = vadd.s32 224, %v1928_v3 }
  0x4e   :  { %v1732_v53 = vpack.c.bf16 %v1046_v51, %v1045_v50  ;;  %v1502_v54 = vsel %vm530_vm15, 1.0, %v1896_v21  ;;  %866 = vst.msk [vmem:[#allocation3 + $0x1c0] sm:$0xff] %vm809_vm0, %v1501_v52  ;;  %v51_v11 = vadd.s32 232, %v1928_v3  ;;  %v80_v12 = vadd.s32 464, %v1928_v3 }
  0x4f   :  { %v1075_v55 = vld [vmem:[#allocation3 + $0x130] sm:$0xff]  ;;  %867 = vst.msk [vmem:[#allocation3 + $0x1c8] sm:$0xff] %vm809_vm0, %v1502_v54  ;;  %v81_v13 = vadd.s32 472, %v1928_v3  ;;  %vm259_vm1 = vcmp.ge.s32.totalorder %v147_v5, 0  ;;  %vm260_vm3 = vcmp.ge.s32.totalorder %v148_v6, 0  ;;  %vm371_vm2 = vcmp.lt.s32.totalorder %v147_v5, 32 }
  0x50   :  { %1733 = vmatpush3.bf16.msra.mxu0 %v1732_v53  ;;  %v1076_v56 = vld [vmem:[#allocation3 + $0x138] sm:$0xff]  ;;  %vm372_vm4 = vcmp.lt.s32.totalorder %v148_v6, 32  ;;  %vm483_vm5 = vmand %vm259_vm1, %vm371_vm2  ;;  %vm289_vm6 = vcmp.ge.s32.totalorder %v177_v8, 0  ;;  %vm290_vm7 = vcmp.ge.s32.totalorder %v178_v9, 0  ;;  %vm401_vm8 = vcmp.lt.s32.totalorder %v177_v8, 32 }
  0x51   :  { %v1760_v57 = vpack.c.bf16 %v1076_v56, %v1075_v55  ;;  %v1063_v58 = vld [vmem:[#allocation3 + $0xd0] sm:$0xff]  ;;  %vm402_vm9 = vcmp.lt.s32.totalorder %v178_v9, 32  ;;  %vm484_vm10 = vmand %vm260_vm3, %vm372_vm4  ;;  %v1455_v14 = vsel %vm483_vm5, 1.0, %v1896_v21  ;;  %v165_v15 = vsub.s32 %v50_v10, %v1932_v7  ;;  %v1842_v10 = vld [vmem:[#allocation4] sm:$0xff] }
  0x52   :  { %v1064_v59 = vld [vmem:[#allocation3 + $0xd8] sm:$0xff]  ;;  %v166_v16 = vsub.s32 %v51_v11, %v1932_v7  ;;  %v195_v17 = vsub.s32 %v80_v12, %v1932_v7  ;;  %v1456_v18 = vsel %vm484_vm10, 1.0, %v1896_v21  ;;  %820 = vst.msk [vmem:[#allocation3 + $0x50] sm:$0xff] %vm809_vm0, %v1455_v14  ;;  %vm513_vm11 = vmand %vm289_vm6, %vm401_vm8  ;;  %v196_v19 = vsub.s32 %v81_v13, %v1932_v7 }
  0x53   :  { %1761 = vmatpush3.bf16.msra.mxu1 %v1760_v57  ;;  %v1734_v60 = vpack.c.bf16 %v1064_v59, %v1063_v58  ;;  %v34_v20 = vadd.s32 96, %v1928_v3  ;;  %v35_v22 = vadd.s32 104, %v1928_v3  ;;  %821 = vst.msk [vmem:[#allocation3 + $0x58] sm:$0xff] %vm809_vm0, %v1456_v18  ;;  %vm514_vm12 = vmand %vm290_vm7, %vm402_vm9  ;;  %v1485_v23 = vsel %vm513_vm11, 1.0, %v1896_v21 }
  0x54   :  { %vm277_vm13 = vcmp.ge.s32.totalorder %v165_v15, 0  ;;  %vm278_vm14 = vcmp.ge.s32.totalorder %v166_v16, 0  ;;  %vm389_vm15 = vcmp.lt.s32.totalorder %v165_v15, 32  ;;  %v1486_v24 = vsel %vm514_vm12, 1.0, %v1896_v21  ;;  %850 = vst.msk [vmem:[#allocation3 + $0x140] sm:$0xff] %vm809_vm0, %v1485_v23 }
  0x55   :  { %1735 = vmatprep.subr.bf16.mxu0 %v1734_v60  ;;  %v1093_v61 = vld [vmem:[#allocation3 + $0x1c0] sm:$0xff]  ;;  %vm390_vm1 = vcmp.lt.s32.totalorder %v166_v16, 32  ;;  %vm501_vm3 = vmand %vm277_vm13, %vm389_vm15  ;;  %vm307_vm2 = vcmp.ge.s32.totalorder %v195_v17, 0  ;;  %vm308_vm4 = vcmp.ge.s32.totalorder %v196_v19, 0  ;;  %851 = vst.msk [vmem:[#allocation3 + $0x148] sm:$0xff] %vm809_vm0, %v1486_v24  ;;  %vm419_vm6 = vcmp.lt.s32.totalorder %v195_v17, 32 }
  0x56   :  { %v1094_v62 = vld [vmem:[#allocation3 + $0x1c8] sm:$0xff]  ;;  %vm502_vm5 = vmand %vm278_vm14, %vm390_vm1  ;;  %v1473_v25 = vsel %vm501_vm3, 1.0, %v1896_v21  ;;  %vm420_vm7 = vcmp.lt.s32.totalorder %v196_v19, 32  ;;  %v149_v26 = vsub.s32 %v34_v20, %v1932_v7  ;;  %v150_v28 = vsub.s32 %v35_v22, %v1932_v7 }
  0x57   :  { %v1762_v63 = vpack.c.bf16 %v1094_v62, %v1093_v61  ;;  %v1474_v27 = vsel %vm502_vm5, 1.0, %v1896_v21  ;;  %838 = vst.msk [vmem:[#allocation3 + $0xe0] sm:$0xff] %vm809_vm0, %v1473_v25  ;;  %vm531_vm8 = vmand %vm307_vm2, %vm419_vm6  ;;  %v64_v29 = vadd.s32 336, %v1928_v3  ;;  %v65_v30 = vadd.s32 344, %v1928_v3 }
  0x58   :  { %839 = vst.msk [vmem:[#allocation3 + $0xe8] sm:$0xff] %vm809_vm0, %v1474_v27  ;;  %vm532_vm9 = vmand %vm308_vm4, %vm420_vm7  ;;  %v1503_v31 = vsel %vm531_vm8, 1.0, %v1896_v21  ;;  %vm261_vm10 = vcmp.ge.s32.totalorder %v149_v26, 0  ;;  %vm373_vm11 = vcmp.lt.s32.totalorder %v149_v26, 32  ;;  %v52_v32 = vadd.s32 240, %v1928_v3 }
  0x59   :  { %1763 = vmatprep.subr.bf16.mxu1 %v1762_v63  ;;  %v1504_v33 = vsel %vm532_vm9, 1.0, %v1896_v21  ;;  %868 = vst.msk [vmem:[#allocation3 + $0x1d0] sm:$0xff] %vm809_vm0, %v1503_v31  ;;  %vm262_vm12 = vcmp.ge.s32.totalorder %v150_v28, 0  ;;  %vm374_vm13 = vcmp.lt.s32.totalorder %v150_v28, 32  ;;  %vm485_vm14 = vmand %vm261_vm10, %vm373_vm11  ;;  %v179_v34 = vsub.s32 %v64_v29, %v1932_v7  ;;  %v1047_v35 = vld [vmem:[#allocation3 + $0x50] sm:$0xff] }
  0x5a   :  { %869 = vst.msk [vmem:[#allocation3 + $0x1d8] sm:$0xff] %vm809_vm0, %v1504_v33  ;;  %vm486_vm15 = vmand %vm262_vm12, %vm374_vm13  ;;  %v1457_v36 = vsel %vm485_vm14, 1.0, %v1896_v21  ;;  %v180_v37 = vsub.s32 %v65_v30, %v1932_v7  ;;  %v53_v38 = vadd.s32 248, %v1928_v3  ;;  %v167_v39 = vsub.s32 %v52_v32, %v1932_v7  ;;  %v1048_v40 = vld [vmem:[#allocation3 + $0x58] sm:$0xff] }
  0x5b   :  { %v1458_v41 = vsel %vm486_vm15, 1.0, %v1896_v21  ;;  %822 = vst.msk [vmem:[#allocation3 + $0x60] sm:$0xff] %vm809_vm0, %v1457_v36  ;;  %vm291_vm1 = vcmp.ge.s32.totalorder %v179_v34, 0  ;;  %vm403_vm3 = vcmp.lt.s32.totalorder %v179_v34, 32  ;;  %v82_v42 = vadd.s32 480, %v1928_v3  ;;  %v1077_v44 = vld [vmem:[#allocation3 + $0x140] sm:$0xff] }
  0x5c   :  { %vm934_vm2 = vcmask 261120   ;;  %v1736_v43 = vpack.c.bf16 %v1048_v40, %v1047_v35  ;;  %823 = vst.msk [vmem:[#allocation3 + $0x68] sm:$0xff] %vm809_vm0, %v1458_v41  ;;  %vm292_vm4 = vcmp.ge.s32.totalorder %v180_v37, 0  ;;  %vm404_vm5 = vcmp.lt.s32.totalorder %v180_v37, 32  ;;  %vm515_vm6 = vmand %vm291_vm1, %vm403_vm3  ;;  %v1078_v45 = vld [vmem:[#allocation3 + $0x148] sm:$0xff] }
  0x5d   :  { %vm516_vm7 = vmand %vm292_vm4, %vm404_vm5  ;;  %v1487_v46 = vsel %vm515_vm6, 1.0, %v1896_v21  ;;  %v168_v47 = vsub.s32 %v53_v38, %v1932_v7  ;;  %vm279_vm8 = vcmp.ge.s32.totalorder %v167_v39, 0  ;;  %vm391_vm9 = vcmp.lt.s32.totalorder %v167_v39, 32 }
  0x5e   :  { %1737 = vmatpush3.bf16.msra.mxu0 %v1736_v43  ;;  %v1764_v48 = vpack.c.bf16 %v1078_v45, %v1077_v44  ;;  %v1065_v49 = vld [vmem:[#allocation3 + $0xe0] sm:$0xff]  ;;  %v1488_v50 = vsel %vm516_vm7, 1.0, %v1896_v21  ;;  %852 = vst.msk [vmem:[#allocation3 + $0x150] sm:$0xff] %vm809_vm0, %v1487_v46  ;;  %vm503_vm10 = vmand %vm279_vm8, %vm391_vm9  ;;  %v83_v51 = vadd.s32 488, %v1928_v3  ;;  %v197_v52 = vsub.s32 %v82_v42, %v1932_v7 }
  0x5f   :  { %vm2477_vm11 = vcmask 523264   ;;  %v1066_v53 = vld [vmem:[#allocation3 + $0xe8] sm:$0xff]  ;;  %853 = vst.msk [vmem:[#allocation3 + $0x158] sm:$0xff] %vm809_vm0, %v1488_v50  ;;  %vm280_vm12 = vcmp.ge.s32.totalorder %v168_v47, 0  ;;  %vm392_vm13 = vcmp.lt.s32.totalorder %v168_v47, 32  ;;  %v1475_v54 = vsel %vm503_vm10, 1.0, %v1896_v21 }
  0x60   :  { %1765 = vmatpush3.bf16.msra.mxu1 %v1764_v48  ;;  %v1738_v55 = vpack.c.bf16 %v1066_v53, %v1065_v49  ;;  %v1095_v56 = vld [vmem:[#allocation3 + $0x1d0] sm:$0xff]  ;;  %vm504_vm14 = vmand %vm280_vm12, %vm392_vm13  ;;  %840 = vst.msk [vmem:[#allocation3 + $0xf0] sm:$0xff] %vm809_vm0, %v1475_v54  ;;  %v198_v57 = vsub.s32 %v83_v51, %v1932_v7  ;;  %vm309_vm15 = vcmp.ge.s32.totalorder %v197_v52, 0  ;;  %vm421_vm1 = vcmp.lt.s32.totalorder %v197_v52, 32  ;;  %v1843_v52 = vld [vmem:[#allocation4 + $0x8] sm:$0xff] }
  0x61   :  { %v1096_v58 = vld [vmem:[#allocation3 + $0x1d8] sm:$0xff]  ;;  %v1476_v59 = vsel %vm504_vm14, 1.0, %v1896_v21  ;;  %vm533_vm3 = vmand %vm309_vm15, %vm421_vm1  ;;  %v36_v60 = vadd.s32 112, %v1928_v3  ;;  %v37_v61 = vadd.s32 120, %v1928_v3  ;;  %v66_v62 = vadd.s32 352, %v1928_v3 }
  0x62   :  { %1739 = vmatprep.subr.bf16.mxu0 %v1738_v55  ;;  %v1766_v1 = vpack.c.bf16 %v1096_v58, %v1095_v56  ;;  %v1049_v2 = vld [vmem:[#allocation3 + $0x60] sm:$0xff]  ;;  %841 = vst.msk [vmem:[#allocation3 + $0xf8] sm:$0xff] %vm809_vm0, %v1476_v59  ;;  %vm310_vm4 = vcmp.ge.s32.totalorder %v198_v57, 0  ;;  %vm422_vm5 = vcmp.lt.s32.totalorder %v198_v57, 32  ;;  %v1505_v4 = vsel %vm533_vm3, 1.0, %v1896_v21 }
  0x63   :  { %vm2478_vm6 = vcmask 785408   ;;  %v1050_v6 = vld [vmem:[#allocation3 + $0x68] sm:$0xff]  ;;  %vm534_vm7 = vmand %vm310_vm4, %vm422_vm5  ;;  %870 = vst.msk [vmem:[#allocation3 + $0x1e0] sm:$0xff] %vm809_vm0, %v1505_v4  ;;  %v151_v8 = vsub.s32 %v36_v60, %v1932_v7  ;;  %v152_v9 = vsub.s32 %v37_v61, %v1932_v7  ;;  %v67_v14 = vadd.s32 360, %v1928_v3 }
  0x64   :  { %1767 = vmatprep.subr.bf16.mxu1 %v1766_v1  ;;  %v1740_v12 = vpack.c.bf16 %v1050_v6, %v1049_v2  ;;  %v1506_v13 = vsel %vm534_vm7, 1.0, %v1896_v21  ;;  %v181_v22 = vsub.s32 %v66_v62, %v1932_v7  ;;  %v84_v24 = vadd.s32 496, %v1928_v3 }
  0x65   :  { %871 = vst.msk [vmem:[#allocation3 + $0x1e8] sm:$0xff] %vm809_vm0, %v1506_v13  ;;  %vm263_vm8 = vcmp.ge.s32.totalorder %v151_v8, 0  ;;  %vm264_vm9 = vcmp.ge.s32.totalorder %v152_v9, 0  ;;  %vm375_vm10 = vcmp.lt.s32.totalorder %v151_v8, 32  ;;  %vm376_vm12 = vcmp.lt.s32.totalorder %v152_v9, 32  ;;  %v1079_v18 = vld [vmem:[#allocation3 + $0x150] sm:$0xff] }
  0x66   :  { %1741 = vmatpush3.bf16.msra.mxu0 %v1740_v12  ;;  %v1080_v19 = vld [vmem:[#allocation3 + $0x158] sm:$0xff]  ;;  %vm2178_vm13 = vmand %vm263_vm8, %vm375_vm10  ;;  %v2184_v23 = vsub.s32 %v67_v14, %v1932_v7  ;;  %vm293_vm15 = vcmp.ge.s32.totalorder %v181_v22, 0  ;;  %vm405_vm3 = vcmp.lt.s32.totalorder %v181_v22, 32  ;;  %v102_v1 = vadd.s32 640, %v1928_v3 }
  0x67   :  { %v1067_v29 = vld [vmem:[#allocation3 + $0xf0] sm:$0xff]  ;;  %vm2193_vm14 = vmand %vm264_vm9, %vm376_vm12  ;;  %v1768_v38 = vpack.c.bf16 %v1080_v19, %v1079_v18  ;;  %v1459_v44 = vsel %vm2178_vm13, 1.0, %v1896_v21  ;;  %v103_v2 = vadd.s32 648, %v1928_v3  ;;  %v68_v4 = vadd.s32 368, %v1928_v3 }
  0x68   :  { %v1460_v45 = vsel %vm2193_vm14, 1.0, %v1896_v21  ;;  %824 = vst.msk [vmem:[#allocation3 + $0x70] sm:$0xff] %vm809_vm0, %v1459_v44  ;;  %vm294_vm1 = vcmp.ge.s32.totalorder %v2184_v23, 0  ;;  %vm406_vm4 = vcmp.lt.s32.totalorder %v2184_v23, 32  ;;  %vm517_vm5 = vmand %vm293_vm15, %vm405_vm3  ;;  %v217_v12 = vsub.s32 %v102_v1, %v1932_v7 }
  0x69   :  { %v1068_v39 = vld [vmem:[#allocation3 + $0xf8] sm:$0xff]  ;;  %825 = vst.msk [vmem:[#allocation3 + $0x78] sm:$0xff] %vm809_vm0, %v1460_v45  ;;  %1769 = vmatpush3.bf16.msra.mxu1 %v1768_v38  ;;  %vm518_vm7 = vmand %vm294_vm1, %vm406_vm4  ;;  %v1489_v6 = vsel %vm517_vm5, 1.0, %v1896_v21  ;;  %v218_v13 = vsub.s32 %v103_v2, %v1932_v7  ;;  %v183_v14 = vsub.s32 %v68_v4, %v1932_v7  ;;  %v86_v20 = vadd.s32 512, %v1928_v3 }
  0x6a   :  { %v1742_v43 = vpack.c.bf16 %v1068_v39, %v1067_v29  ;;  %v1097_v50 = vld [vmem:[#allocation3 + $0x1e0] sm:$0xff]  ;;  %854 = vst.msk [vmem:[#allocation3 + $0x160] sm:$0xff] %vm809_vm0, %v1489_v6  ;;  %vm329_vm15 = vcmp.ge.s32.totalorder %v217_v12, 0  ;;  %vm441_vm3 = vcmp.lt.s32.totalorder %v217_v12, 32  ;;  %v87_v22 = vadd.s32 520, %v1928_v3 }
  0x6b   :  { %vm330_vm1 = vcmp.ge.s32.totalorder %v218_v13, 0  ;;  %vm442_vm4 = vcmp.lt.s32.totalorder %v218_v13, 32  ;;  %vm553_vm5 = vmand %vm329_vm15, %vm441_vm3  ;;  %v89_v38 = vadd.s32 536, %v1928_v3  ;;  %v120_v2 = vadd.s32 784, %v1928_v3 }
  0x6c   :  { %v1098_v56 = vld [vmem:[#allocation3 + $0x1e8] sm:$0xff]  ;;  %1743 = vmatprep.subr.bf16.mxu0 %v1742_v43  ;;  %v1525_v19 = vsel %vm553_vm5, 1.0, %v1896_v21  ;;  %v119_v43 = vadd.s32 776, %v1928_v3  ;;  %v121_v4 = vadd.s32 792, %v1928_v3 }
  0x6d   :  { %v1770_v62 = vpack.c.bf16 %v1098_v56, %v1097_v50  ;;  %890 = vst.msk [vmem:[#allocation3 + $0x280] sm:$0xff] %vm809_vm0, %v1525_v19  ;;  %v92_v19 = vadd.s32 560, %v1928_v3 }
  0x6e   :  { %v236_v12 = vsub.s32 %v121_v4, %v1932_v7 }
  0x6f   :  { %1771 = vmatprep.subr.bf16.mxu1 %v1770_v62  ;;  %v1051_v9 = vld [vmem:[#allocation3 + $0x70] sm:$0xff]  ;;  %v90_v62 = vadd.s32 544, %v1928_v3 }
  0x71   :  { %v1081_v29 = vld [vmem:[#allocation3 + $0x160] sm:$0xff]  ;;  %v205_v6 = vsub.s32 %v90_v62, %v1932_v7 }
  0x74   :  { %v1117_v45 = vld [vmem:[#allocation3 + $0x280] sm:$0xff] }
  0x85   :  { %v2164_v63 = vpop.permute.xlu1 %928  ;;  %v932_v0 = vpop.permute.xlu0 %931 }
  0x86   :  { %v974_v5 = vsel %vm934_vm2, %v2164_v63, %v932_v0  ;;  %v950_v11 = vsel %vm934_vm2, %v932_v0, %v1842_v10 }
  0x87   :  { %v975_v17 = vsel %vm2477_vm11, %v974_v5, %v1842_v10  ;;  %v69_v5 = vadd.s32 376, %v1928_v3 }
  0x89   :  { %v954_v15 = vpop.permute.xlu1 %953  ;;  %v926_v16 = vpop.permute.xlu0 %925  ;;  %v184_v18 = vsub.s32 %v69_v5, %v1932_v7  ;;  %v1897_v5 = vmov 0.0|0.0  }
  0x8a   :  { %v935_v25 = vsel %vm934_vm2, %v1842_v10, %v926_v16  ;;  %v996_v26 = vsel %vm934_vm2, %v926_v16, %v2164_v63  ;;  %v959_v27 = vmul.f32 %v954_v15, %v950_v11  ;;  %v951_v28 = vsel %vm2477_vm11, %v950_v11, %v926_v16 }
  0x8b   :  { %v937_v31 = vsel %vm2477_vm11, %v935_v25, %v2164_v63  ;;  %v952_v32 = vsel %vm2478_vm6, %v951_v28, %v2164_v63  ;;  %v955_v33 = vsel %vm2477_vm11, %v2164_v63, %v954_v15  ;;  %v976_v34 = vsel %vm2478_vm6, %v975_v17, %v926_v16 }
  0x8c   :  { %964 = vrot.lane.b32.xlu1 %v959_v27, %s1894_s19  ;;  %v939_v35 = vsel %vm2478_vm6, %v937_v31, %v932_v0  ;;  %v958_v36 = vmul.f32 %v955_v33, %v952_v32  ;;  %v997_v37 = vsel %vm2477_vm11, %v996_v26, %v932_v0  ;;  %v1490_v11 = vsel %vm518_vm7, 1.0, %v1896_v21 }
  0x8d   :  { %v942_v40 = vpop.permute.xlu1 %941  ;;  %v978_v41 = vpop.permute.xlu0 %977  ;;  %v998_v42 = vsel %vm2478_vm6, %v997_v37, %v1842_v10  ;;  %v1052_v10 = vld [vmem:[#allocation3 + $0x78] sm:$0xff]  ;;  %855 = vst.msk [vmem:[#allocation3 + $0x168] sm:$0xff] %vm809_vm0, %v1490_v11  ;;  %vm295_vm7 = vcmp.ge.s32.totalorder %v183_v14, 0  ;;  %v201_v26 = vsub.s32 %v86_v20, %v1932_v7  ;;  %v202_v27 = vsub.s32 %v87_v22, %v1932_v7 }
  0x8e   :  { %v943_v46 = vsel %vm2478_vm6, %v932_v0, %v942_v40  ;;  %v947_v47 = vmul.f32 %v942_v40, %v937_v31  ;;  %v979_v48 = vsel %vm934_vm2, %v926_v16, %v978_v41  ;;  %v983_v49 = vmul.f32 %v978_v41, %v2164_v63  ;;  %962 = vrot.lane.b32.xlu0 %v958_v36, %s1894_s19 }
  0x8f   :  { %v946_v51 = vmul.f32 %v943_v46, %v939_v35  ;;  %v1007_v53 = vsel %vm934_vm2, %v1843_v52, %v978_v41  ;;  %v982_v54 = vmul.f32 %v979_v48, %v976_v34  ;;  %v999_v55 = vmul.f32 %v1843_v52, %v998_v42 }
  0x90   :  { %949 = vst.msk [vmem:[#allocation2 + $0x8] sm:$0xff] %vm2478_vm6, %v947_v47  ;;  %988 = vrot.lane.b32.xlu1 %v983_v49, %s1895_s20  ;;  %v1008_v57 = vsel %vm2477_vm11, %v1007_v53, %v954_v15  ;;  %v1016_v58 = vsel %vm934_vm2, %v942_v40, %v1843_v52  ;;  %v1024_v59 = vmul.f32 %v1843_v52, %v942_v40  ;;  %v85_v63 = vadd.s32 504, %v1928_v3 }
  0x91   :  { %948 = vst [vmem:[#allocation2] sm:$0xff] %v946_v51  ;;  %v1009_v60 = vmul.f32 %v1008_v57, %v942_v40  ;;  %v1017_v61 = vmul.f32 %v1016_v58, %v954_v15  ;;  %v199_v0 = vsub.s32 %v84_v24, %v1932_v7  ;;  %v1744_v15 = vpack.c.bf16 %v1052_v10, %v1051_v9 }
  0x92   :  { %986 = vrot.lane.b32.xlu0 %v982_v54, %s1895_s20  ;;  %v200_v8 = vsub.s32 %v85_v63, %v1932_v7  ;;  %v104_v24 = vadd.s32 656, %v1928_v3  ;;  %v105_v28 = vadd.s32 664, %v1928_v3  ;;  %v88_v32 = vadd.s32 528, %v1928_v3 }
  0x93   :  { %vm311_vm8 = vcmp.ge.s32.totalorder %v199_v0, 0  ;;  %vm423_vm9 = vcmp.lt.s32.totalorder %v199_v0, 32  ;;  %1745 = vmatpush3.bf16.msra.mxu0 %v1744_v15  ;;  %vm313_vm15 = vcmp.ge.s32.totalorder %v201_v26, 0  ;;  %vm425_vm3 = vcmp.lt.s32.totalorder %v201_v26, 32 }
  0x94   :  { %1011 = vrot.lane.b32.xlu1 %v1009_v60, %s1893_s18  ;;  %vm535_vm10 = vmand %vm311_vm8, %vm423_vm9  ;;  %vm312_vm12 = vcmp.ge.s32.totalorder %v200_v8, 0  ;;  %vm424_vm13 = vcmp.lt.s32.totalorder %v200_v8, 32  ;;  %vm407_vm8 = vcmp.lt.s32.totalorder %v183_v14, 32  ;;  %v219_v31 = vsub.s32 %v104_v24, %v1932_v7  ;;  %v1082_v33 = vld [vmem:[#allocation3 + $0x168] sm:$0xff] }
  0x95   :  { %v1507_v16 = vsel %vm535_vm10, 1.0, %v1896_v21  ;;  %vm536_vm14 = vmand %vm312_vm12, %vm424_vm13  ;;  %vm296_vm10 = vcmp.ge.s32.totalorder %v184_v18, 0  ;;  %vm408_vm12 = vcmp.lt.s32.totalorder %v184_v18, 32  ;;  %v1772_v34 = vpack.c.bf16 %v1082_v33, %v1081_v29 }
  0x96   :  { %1001 = vrot.lane.b32.xlu0 %v999_v55, %s1893_s18  ;;  %872 = vst.msk [vmem:[#allocation3 + $0x1f0] sm:$0xff] %vm809_vm0, %v1507_v16  ;;  %v1508_v17 = vsel %vm536_vm14, 1.0, %v1896_v21  ;;  %vm554_vm9 = vmand %vm330_vm1, %vm442_vm4  ;;  %vm314_vm1 = vcmp.ge.s32.totalorder %v202_v27, 0  ;;  %vm426_vm4 = vcmp.lt.s32.totalorder %v202_v27, 32  ;;  %v220_v36 = vsub.s32 %v105_v28, %v1932_v7 }
  0x97   :  { %873 = vst.msk [vmem:[#allocation3 + $0x1f8] sm:$0xff] %vm809_vm0, %v1508_v17  ;;  %v1526_v23 = vsel %vm554_vm9, 1.0, %v1896_v21  ;;  %vm519_vm13 = vmand %vm295_vm7, %vm407_vm8  ;;  %vm331_vm7 = vcmp.ge.s32.totalorder %v219_v31, 0  ;;  %vm443_vm8 = vcmp.lt.s32.totalorder %v219_v31, 32  ;;  %v203_v39 = vsub.s32 %v88_v32, %v1932_v7  ;;  %1773 = vmatpush3.bf16.msra.mxu1 %v1772_v34 }
  0x98   :  { %1026 = vrot.lane.b32.xlu1 %v1024_v59, %s1895_s20  ;;  %891 = vst.msk [vmem:[#allocation3 + $0x288] sm:$0xff] %vm809_vm0, %v1526_v23  ;;  %vm520_vm14 = vmand %vm296_vm10, %vm408_vm12  ;;  %v1491_v25 = vsel %vm519_vm13, 1.0, %v1896_v21  ;;  %v118_v40 = vadd.s32 768, %v1928_v3  ;;  %vm332_vm10 = vcmp.ge.s32.totalorder %v220_v36, 0  ;;  %vm444_vm12 = vcmp.lt.s32.totalorder %v220_v36, 32 }
  0x99   :  { %v1492_v30 = vsel %vm520_vm14, 1.0, %v1896_v21  ;;  %856 = vst.msk [vmem:[#allocation3 + $0x170] sm:$0xff] %vm809_vm0, %v1491_v25  ;;  %vm537_vm5 = vmand %vm313_vm15, %vm425_vm3  ;;  %v204_v47 = vsub.s32 %v89_v38, %v1932_v7  ;;  %vm315_vm15 = vcmp.ge.s32.totalorder %v203_v39, 0  ;;  %v234_v51 = vsub.s32 %v119_v43, %v1932_v7 }
  0x9a   :  { %1019 = vrot.lane.b32.xlu0 %v1017_v61, %s1895_s20  ;;  %857 = vst.msk [vmem:[#allocation3 + $0x178] sm:$0xff] %vm809_vm0, %v1492_v30  ;;  %vm538_vm9 = vmand %vm314_vm1, %vm426_vm4  ;;  %v1509_v37 = vsel %vm537_vm5, 1.0, %v1896_v21  ;;  %vm427_vm1 = vcmp.lt.s32.totalorder %v203_v39, 32  ;;  %v233_v50 = vsub.s32 %v118_v40, %v1932_v7  ;;  %v106_v54 = vadd.s32 672, %v1928_v3 }
  0x9b   :  { %v1510_v42 = vsel %vm538_vm9, 1.0, %v1896_v21  ;;  %874 = vst.msk [vmem:[#allocation3 + $0x200] sm:$0xff] %vm809_vm0, %v1509_v37  ;;  %vm555_vm13 = vmand %vm331_vm7, %vm443_vm8  ;;  %vm316_vm3 = vcmp.ge.s32.totalorder %v204_v47, 0  ;;  %vm428_vm4 = vcmp.lt.s32.totalorder %v204_v47, 32  ;;  %vm346_vm9 = vcmp.ge.s32.totalorder %v234_v51, 0 }
  0x9c   :  { %875 = vst.msk [vmem:[#allocation3 + $0x208] sm:$0xff] %vm809_vm0, %v1510_v42  ;;  %vm556_vm14 = vmand %vm332_vm10, %vm444_vm12  ;;  %v1527_v46 = vsel %vm555_vm13, 1.0, %v1896_v21  ;;  %vm345_vm8 = vcmp.ge.s32.totalorder %v233_v50, 0  ;;  %vm457_vm10 = vcmp.lt.s32.totalorder %v233_v50, 32  ;;  %vm458_vm12 = vcmp.lt.s32.totalorder %v234_v51, 32 }
  0x9d   :  { %v1099_v35 = vld [vmem:[#allocation3 + $0x1f0] sm:$0xff]  ;;  %v1528_v49 = vsel %vm556_vm14, 1.0, %v1896_v21  ;;  %892 = vst.msk [vmem:[#allocation3 + $0x290] sm:$0xff] %vm809_vm0, %v1527_v46  ;;  %vm539_vm5 = vmand %vm315_vm15, %vm427_vm1  ;;  %v107_v59 = vadd.s32 680, %v1928_v3  ;;  %v221_v61 = vsub.s32 %v106_v54, %v1932_v7  ;;  %v91_v63 = vadd.s32 552, %v1928_v3 }
  0x9e   :  { %v1100_v41 = vld [vmem:[#allocation3 + $0x1f8] sm:$0xff]  ;;  %893 = vst.msk [vmem:[#allocation3 + $0x298] sm:$0xff] %vm809_vm0, %v1528_v49  ;;  %vm540_vm7 = vmand %vm316_vm3, %vm428_vm4  ;;  %v1511_v56 = vsel %vm539_vm5, 1.0, %v1896_v21  ;;  %v235_v9 = vsub.s32 %v120_v2, %v1932_v7  ;;  %v108_v14 = vadd.s32 688, %v1928_v3  ;;  %v109_v16 = vadd.s32 696, %v1928_v3 }
  0x9f   :  { %v1774_v44 = vpack.c.bf16 %v1100_v41, %v1099_v35  ;;  %v1118_v48 = vld [vmem:[#allocation3 + $0x288] sm:$0xff]  ;;  %v1512_v58 = vsel %vm540_vm7, 1.0, %v1896_v21  ;;  %876 = vst.msk [vmem:[#allocation3 + $0x210] sm:$0xff] %vm809_vm0, %v1511_v56  ;;  %vm569_vm13 = vmand %vm345_vm8, %vm457_vm10  ;;  %v222_v1 = vsub.s32 %v107_v59, %v1932_v7  ;;  %vm333_vm15 = vcmp.ge.s32.totalorder %v221_v61, 0 }
  0xa0   :  { %v1778_v52 = vpack.c.bf16 %v1118_v48, %v1117_v45  ;;  %v1083_v53 = vld [vmem:[#allocation3 + $0x170] sm:$0xff]  ;;  %877 = vst.msk [vmem:[#allocation3 + $0x218] sm:$0xff] %vm809_vm0, %v1512_v58  ;;  %vm570_vm14 = vmand %vm346_vm9, %vm458_vm12  ;;  %v1541_v60 = vsel %vm569_vm13, 1.0, %v1896_v21  ;;  %vm445_vm1 = vcmp.lt.s32.totalorder %v221_v61, 32  ;;  %v206_v8 = vsub.s32 %v91_v63, %v1932_v7 }
  0xa1   :  { %1775 = vmatprep.subr.bf16.mxu1 %v1774_v44  ;;  %v1084_v55 = vld [vmem:[#allocation3 + $0x178] sm:$0xff]  ;;  %v1542_v0 = vsel %vm570_vm14, 1.0, %v1896_v21  ;;  %906 = vst.msk [vmem:[#allocation3 + $0x300] sm:$0xff] %vm809_vm0, %v1541_v60  ;;  %vm334_vm3 = vcmp.ge.s32.totalorder %v222_v1, 0  ;;  %vm446_vm4 = vcmp.lt.s32.totalorder %v222_v1, 32  ;;  %vm557_vm5 = vmand %vm333_vm15, %vm445_vm1  ;;  %vm317_vm8 = vcmp.ge.s32.totalorder %v205_v6, 0 }
  0xa2   :  { %1779 = vmatprep.subr.bf16.mxu0 %v1778_v52  ;;  %v1776_v57 = vpack.c.bf16 %v1084_v55, %v1083_v53  ;;  %907 = vst.msk [vmem:[#allocation3 + $0x308] sm:$0xff] %vm809_vm0, %v1542_v0  ;;  %vm558_vm7 = vmand %vm334_vm3, %vm446_vm4  ;;  %v1529_v10 = vsel %vm557_vm5, 1.0, %v1896_v21  ;;  %vm318_vm9 = vcmp.ge.s32.totalorder %v206_v8, 0  ;;  %vm429_vm10 = vcmp.lt.s32.totalorder %v205_v6, 32 }
  0xa3   :  { %v1530_v11 = vsel %vm558_vm7, 1.0, %v1896_v21  ;;  %894 = vst.msk [vmem:[#allocation3 + $0x2a0] sm:$0xff] %vm809_vm0, %v1529_v10  ;;  %vm430_vm12 = vcmp.lt.s32.totalorder %v206_v8, 32  ;;  %vm541_vm13 = vmand %vm317_vm8, %vm429_vm10  ;;  %vm347_vm15 = vcmp.ge.s32.totalorder %v235_v9, 0  ;;  %vm459_vm1 = vcmp.lt.s32.totalorder %v235_v9, 32 }
  0xa4   :  { %1777 = vmatpush3.bf16.msra.mxu1 %v1776_v57  ;;  %895 = vst.msk [vmem:[#allocation3 + $0x2a8] sm:$0xff] %vm809_vm0, %v1530_v11  ;;  %vm542_vm14 = vmand %vm318_vm9, %vm430_vm12  ;;  %v1513_v13 = vsel %vm541_vm13, 1.0, %v1896_v21  ;;  %vm348_vm3 = vcmp.ge.s32.totalorder %v236_v12, 0  ;;  %vm460_vm4 = vcmp.lt.s32.totalorder %v236_v12, 32  ;;  %v223_v18 = vsub.s32 %v108_v14, %v1932_v7 }
  0xa5   :  { %1810 = vmatprep.subr.bf16.mxu1 %v1897_v5  ;;  %v1514_v15 = vsel %vm542_vm14, 1.0, %v1896_v21  ;;  %878 = vst.msk [vmem:[#allocation3 + $0x220] sm:$0xff] %vm809_vm0, %v1513_v13  ;;  %vm571_vm5 = vmand %vm347_vm15, %vm459_vm1  ;;  %v224_v22 = vsub.s32 %v109_v16, %v1932_v7  ;;  %v93_v23 = vadd.s32 568, %v1928_v3  ;;  %v122_v24 = vadd.s32 800, %v1928_v3 }
  0xa6   :  { %879 = vst.msk [vmem:[#allocation3 + $0x228] sm:$0xff] %vm809_vm0, %v1514_v15  ;;  %vm572_vm7 = vmand %vm348_vm3, %vm460_vm4  ;;  %v1543_v17 = vsel %vm571_vm5, 1.0, %v1896_v21  ;;  %vm335_vm8 = vcmp.ge.s32.totalorder %v223_v18, 0  ;;  %vm447_vm9 = vcmp.lt.s32.totalorder %v223_v18, 32  ;;  %v207_v25 = vsub.s32 %v92_v19, %v1932_v7 }
  0xa7   :  { %v1544_v20 = vsel %vm572_vm7, 1.0, %v1896_v21  ;;  %908 = vst.msk [vmem:[#allocation3 + $0x310] sm:$0xff] %vm809_vm0, %v1543_v17  ;;  %vm336_vm10 = vcmp.ge.s32.totalorder %v224_v22, 0  ;;  %vm448_vm12 = vcmp.lt.s32.totalorder %v224_v22, 32  ;;  %vm559_vm13 = vmand %vm335_vm8, %vm447_vm9  ;;  %v208_v26 = vsub.s32 %v93_v23, %v1932_v7 }
  0xa8   :  { %909 = vst.msk [vmem:[#allocation3 + $0x318] sm:$0xff] %vm809_vm0, %v1544_v20  ;;  %v123_v27 = vadd.s32 808, %v1928_v3  ;;  %vm560_vm14 = vmand %vm336_vm10, %vm448_vm12  ;;  %v1531_v28 = vsel %vm559_vm13, 1.0, %v1896_v21  ;;  %vm319_vm15 = vcmp.ge.s32.totalorder %v207_v25, 0  ;;  %vm431_vm1 = vcmp.lt.s32.totalorder %v207_v25, 32 }
  0xa9   :  { %v237_v29 = vsub.s32 %v122_v24, %v1932_v7  ;;  %v1532_v30 = vsel %vm560_vm14, 1.0, %v1896_v21  ;;  %896 = vst.msk [vmem:[#allocation3 + $0x2b0] sm:$0xff] %vm809_vm0, %v1531_v28  ;;  %vm320_vm3 = vcmp.ge.s32.totalorder %v208_v26, 0  ;;  %vm432_vm4 = vcmp.lt.s32.totalorder %v208_v26, 32  ;;  %vm543_vm5 = vmand %vm319_vm15, %vm431_vm1 }
  0xaa   :  { %v238_v31 = vsub.s32 %v123_v27, %v1932_v7  ;;  %897 = vst.msk [vmem:[#allocation3 + $0x2b8] sm:$0xff] %vm809_vm0, %v1532_v30  ;;  %vm544_vm7 = vmand %vm320_vm3, %vm432_vm4  ;;  %v1515_v32 = vsel %vm543_vm5, 1.0, %v1896_v21  ;;  %v110_v34 = vadd.s32 704, %v1928_v3  ;;  %v111_v36 = vadd.s32 712, %v1928_v3 }
  0xab   :  { %vm349_vm8 = vcmp.ge.s32.totalorder %v237_v29, 0  ;;  %vm461_vm9 = vcmp.lt.s32.totalorder %v237_v29, 32  ;;  %v1516_v33 = vsel %vm544_vm7, 1.0, %v1896_v21  ;;  %880 = vst.msk [vmem:[#allocation3 + $0x230] sm:$0xff] %vm809_vm0, %v1515_v32  ;;  %v94_v37 = vadd.s32 576, %v1928_v3 }
  0xac   :  { %vm350_vm10 = vcmp.ge.s32.totalorder %v238_v31, 0  ;;  %vm462_vm12 = vcmp.lt.s32.totalorder %v238_v31, 32  ;;  %vm573_vm13 = vmand %vm349_vm8, %vm461_vm9  ;;  %881 = vst.msk [vmem:[#allocation3 + $0x238] sm:$0xff] %vm809_vm0, %v1516_v33  ;;  %v225_v39 = vsub.s32 %v110_v34, %v1932_v7  ;;  %v95_v40 = vadd.s32 584, %v1928_v3 }
  0xad   :  { %vm574_vm14 = vmand %vm350_vm10, %vm462_vm12  ;;  %v1545_v35 = vsel %vm573_vm13, 1.0, %v1896_v21  ;;  %v124_v41 = vadd.s32 816, %v1928_v3  ;;  %v226_v42 = vsub.s32 %v111_v36, %v1932_v7  ;;  %v209_v43 = vsub.s32 %v94_v37, %v1932_v7 }
  0xae   :  { %v1546_v38 = vsel %vm574_vm14, 1.0, %v1896_v21  ;;  %910 = vst.msk [vmem:[#allocation3 + $0x320] sm:$0xff] %vm809_vm0, %v1545_v35  ;;  %v125_v44 = vadd.s32 824, %v1928_v3  ;;  %vm337_vm15 = vcmp.ge.s32.totalorder %v225_v39, 0  ;;  %vm449_vm1 = vcmp.lt.s32.totalorder %v225_v39, 32 }
  0xaf   :  { %911 = vst.msk [vmem:[#allocation3 + $0x328] sm:$0xff] %vm809_vm0, %v1546_v38  ;;  %v210_v45 = vsub.s32 %v95_v40, %v1932_v7  ;;  %v239_v46 = vsub.s32 %v124_v41, %v1932_v7  ;;  %vm338_vm3 = vcmp.ge.s32.totalorder %v226_v42, 0  ;;  %vm450_vm4 = vcmp.lt.s32.totalorder %v226_v42, 32  ;;  %vm561_vm5 = vmand %vm337_vm15, %vm449_vm1 }
  0xb0   :  { %vm321_vm7 = vcmp.ge.s32.totalorder %v209_v43, 0  ;;  %vm433_vm8 = vcmp.lt.s32.totalorder %v209_v43, 32  ;;  %vm562_vm9 = vmand %vm338_vm3, %vm450_vm4  ;;  %v1533_v47 = vsel %vm561_vm5, 1.0, %v1896_v21  ;;  %v240_v48 = vsub.s32 %v125_v44, %v1932_v7 }
  0xb1   :  { %vm322_vm10 = vcmp.ge.s32.totalorder %v210_v45, 0  ;;  %vm434_vm12 = vcmp.lt.s32.totalorder %v210_v45, 32  ;;  %v1534_v49 = vsel %vm562_vm9, 1.0, %v1896_v21  ;;  %898 = vst.msk [vmem:[#allocation3 + $0x2c0] sm:$0xff] %vm809_vm0, %v1533_v47  ;;  %vm545_vm13 = vmand %vm321_vm7, %vm433_vm8  ;;  %vm351_vm14 = vcmp.ge.s32.totalorder %v239_v46, 0 }
  0xb2   :  { %vm463_vm11 = vcmp.lt.s32.totalorder %v239_v46, 32  ;;  %899 = vst.msk [vmem:[#allocation3 + $0x2c8] sm:$0xff] %vm809_vm0, %v1534_v49  ;;  %vm546_vm6 = vmand %vm322_vm10, %vm434_vm12  ;;  %v1517_v50 = vsel %vm545_vm13, 1.0, %v1896_v21  ;;  %vm352_vm15 = vcmp.ge.s32.totalorder %v240_v48, 0  ;;  %vm464_vm1 = vcmp.lt.s32.totalorder %v240_v48, 32 }
  0xb3   :  { %v112_v51 = vadd.s32 720, %v1928_v3  ;;  %v1518_v52 = vsel %vm546_vm6, 1.0, %v1896_v21  ;;  %882 = vst.msk [vmem:[#allocation3 + $0x240] sm:$0xff] %vm809_vm0, %v1517_v50  ;;  %vm575_vm3 = vmand %vm351_vm14, %vm463_vm11  ;;  %v113_v53 = vadd.s32 728, %v1928_v3  ;;  %v96_v54 = vadd.s32 592, %v1928_v3 }
  0xb4   :  { %883 = vst.msk [vmem:[#allocation3 + $0x248] sm:$0xff] %vm809_vm0, %v1518_v52  ;;  %vm576_vm4 = vmand %vm352_vm15, %vm464_vm1  ;;  %v1547_v55 = vsel %vm575_vm3, 1.0, %v1896_v21  ;;  %v97_v57 = vadd.s32 600, %v1928_v3  ;;  %v126_v58 = vadd.s32 832, %v1928_v3  ;;  %v127_v63 = vadd.s32 840, %v1928_v3 }
  0xb5   :  { %v227_v56 = vsub.s32 %v112_v51, %v1932_v7  ;;  %v1548_v59 = vsel %vm576_vm4, 1.0, %v1896_v21  ;;  %912 = vst.msk [vmem:[#allocation3 + $0x330] sm:$0xff] %vm809_vm0, %v1547_v55  ;;  %v228_v60 = vsub.s32 %v113_v53, %v1932_v7  ;;  %v211_v61 = vsub.s32 %v96_v54, %v1932_v7 }
  0xb6   :  { %913 = vst.msk [vmem:[#allocation3 + $0x338] sm:$0xff] %vm809_vm0, %v1548_v59  ;;  %v212_v62 = vsub.s32 %v97_v57, %v1932_v7  ;;  %v241_v1 = vsub.s32 %v126_v58, %v1932_v7  ;;  %v242_v4 = vsub.s32 %v127_v63, %v1932_v7  ;;  %v114_v6 = vadd.s32 736, %v1928_v3  ;;  %v1101_v57 = vld [vmem:[#allocation3 + $0x200] sm:$0xff]  ;;  %v1102_v58 = vld [vmem:[#allocation3 + $0x208] sm:$0xff] }
  0xb7   :  { %vm339_vm11 = vcmp.ge.s32.totalorder %v227_v56, 0  ;;  %vm451_vm6 = vcmp.lt.s32.totalorder %v227_v56, 32  ;;  %vm340_vm5 = vcmp.ge.s32.totalorder %v228_v60, 0  ;;  %vm452_vm7 = vcmp.lt.s32.totalorder %v228_v60, 32  ;;  %v1119_v60 = vld [vmem:[#allocation3 + $0x290] sm:$0xff] }
  0xb8   :  { %vm563_vm8 = vmand %vm339_vm11, %vm451_vm6  ;;  %vm323_vm9 = vcmp.ge.s32.totalorder %v211_v61, 0  ;;  %vm435_vm10 = vcmp.lt.s32.totalorder %v211_v61, 32  ;;  %vm324_vm13 = vcmp.ge.s32.totalorder %v212_v62, 0  ;;  %vm436_vm14 = vcmp.lt.s32.totalorder %v212_v62, 32  ;;  %v1120_v61 = vld [vmem:[#allocation3 + $0x298] sm:$0xff] }
  0xb9   :  { %vm564_vm12 = vmand %vm340_vm5, %vm452_vm7  ;;  %v1535_v0 = vsel %vm563_vm8, 1.0, %v1896_v21  ;;  %v115_v8 = vadd.s32 744, %v1928_v3  ;;  %vm353_vm3 = vcmp.ge.s32.totalorder %v241_v1, 0  ;;  %vm465_vm4 = vcmp.lt.s32.totalorder %v241_v1, 32  ;;  %v1104_v1 = vld [vmem:[#allocation3 + $0x218] sm:$0xff] }
  0xba   :  { %v1536_v2 = vsel %vm564_vm12, 1.0, %v1896_v21  ;;  %900 = vst.msk [vmem:[#allocation3 + $0x2d0] sm:$0xff] %vm809_vm0, %v1535_v0  ;;  %vm547_vm15 = vmand %vm323_vm9, %vm435_vm10  ;;  %vm354_vm11 = vcmp.ge.s32.totalorder %v242_v4, 0  ;;  %vm466_vm6 = vcmp.lt.s32.totalorder %v242_v4, 32  ;;  %v229_v11 = vsub.s32 %v114_v6, %v1932_v7  ;;  %v1103_v0 = vld [vmem:[#allocation3 + $0x210] sm:$0xff] }
  0xbb   :  { %901 = vst.msk [vmem:[#allocation3 + $0x2d8] sm:$0xff] %vm809_vm0, %v1536_v2  ;;  %vm548_vm1 = vmand %vm324_vm13, %vm436_vm14  ;;  %v1519_v9 = vsel %vm547_vm15, 1.0, %v1896_v21  ;;  %v230_v13 = vsub.s32 %v115_v8, %v1932_v7  ;;  %v98_v14 = vadd.s32 608, %v1928_v3  ;;  %v99_v16 = vadd.s32 616, %v1928_v3  ;;  %v1133_v8 = vld [vmem:[#allocation3 + $0x300] sm:$0xff] }
  0xbc   :  { %v1520_v10 = vsel %vm548_vm1, 1.0, %v1896_v21  ;;  %884 = vst.msk [vmem:[#allocation3 + $0x250] sm:$0xff] %vm809_vm0, %v1519_v9  ;;  %vm577_vm5 = vmand %vm353_vm3, %vm465_vm4  ;;  %vm341_vm8 = vcmp.ge.s32.totalorder %v229_v11, 0  ;;  %vm453_vm9 = vcmp.lt.s32.totalorder %v229_v11, 32  ;;  %v128_v20 = vadd.s32 848, %v1928_v3  ;;  %v1134_v9 = vld [vmem:[#allocation3 + $0x308] sm:$0xff] }
  0xbd   :  { %885 = vst.msk [vmem:[#allocation3 + $0x258] sm:$0xff] %vm809_vm0, %v1520_v10  ;;  %vm578_vm7 = vmand %vm354_vm11, %vm466_vm6  ;;  %v1549_v12 = vsel %vm577_vm5, 1.0, %v1896_v21  ;;  %vm342_vm10 = vcmp.ge.s32.totalorder %v230_v13, 0  ;;  %vm454_vm12 = vcmp.lt.s32.totalorder %v230_v13, 32  ;;  %v213_v17 = vsub.s32 %v98_v14, %v1932_v7  ;;  %v1030_v10 = vld [vmem:[#allocation2] sm:$0xff]  ;;  %v1121_v11 = vld [vmem:[#allocation3 + $0x2a0] sm:$0xff] }
  0xbe   :  { %v1550_v15 = vsel %vm578_vm7, 1.0, %v1896_v21  ;;  %914 = vst.msk [vmem:[#allocation3 + $0x340] sm:$0xff] %vm809_vm0, %v1549_v12  ;;  %vm565_vm13 = vmand %vm341_vm8, %vm453_vm9  ;;  %v214_v19 = vsub.s32 %v99_v16, %v1932_v7  ;;  %v129_v22 = vadd.s32 856, %v1928_v3  ;;  %v116_v24 = vadd.s32 752, %v1928_v3  ;;  %v1122_v12 = vld [vmem:[#allocation3 + $0x2a8] sm:$0xff] }
  0xbf   :  { %915 = vst.msk [vmem:[#allocation3 + $0x348] sm:$0xff] %vm809_vm0, %v1550_v15  ;;  %vm566_vm14 = vmand %vm342_vm10, %vm454_vm12  ;;  %v1537_v18 = vsel %vm565_vm13, 1.0, %v1896_v21  ;;  %vm325_vm15 = vcmp.ge.s32.totalorder %v213_v17, 0  ;;  %vm437_vm1 = vcmp.lt.s32.totalorder %v213_v17, 32  ;;  %v243_v25 = vsub.s32 %v128_v20, %v1932_v7  ;;  %v1105_v15 = vld [vmem:[#allocation3 + $0x220] sm:$0xff]  ;;  %v1106_v16 = vld [vmem:[#allocation3 + $0x228] sm:$0xff] }
  0xc0   :  { %v1538_v23 = vsel %vm566_vm14, 1.0, %v1896_v21  ;;  %902 = vst.msk [vmem:[#allocation3 + $0x2e0] sm:$0xff] %vm809_vm0, %v1537_v18  ;;  %vm326_vm3 = vcmp.ge.s32.totalorder %v214_v19, 0  ;;  %vm438_vm4 = vcmp.lt.s32.totalorder %v214_v19, 32  ;;  %vm549_vm11 = vmand %vm325_vm15, %vm437_vm1  ;;  %v244_v26 = vsub.s32 %v129_v22, %v1932_v7  ;;  %v1135_v22 = vld [vmem:[#allocation3 + $0x310] sm:$0xff] }
  0xc1   :  { %903 = vst.msk [vmem:[#allocation3 + $0x2e8] sm:$0xff] %vm809_vm0, %v1538_v23  ;;  %vm550_vm6 = vmand %vm326_vm3, %vm438_vm4  ;;  %v1521_v27 = vsel %vm549_vm11, 1.0, %v1896_v21  ;;  %v117_v28 = vadd.s32 760, %v1928_v3  ;;  %v231_v29 = vsub.s32 %v116_v24, %v1932_v7  ;;  %vm355_vm5 = vcmp.ge.s32.totalorder %v243_v25, 0  ;;  %v1136_v23 = vld [vmem:[#allocation3 + $0x318] sm:$0xff]  ;;  %v1123_v24 = vld [vmem:[#allocation3 + $0x2b0] sm:$0xff] }
  0xc2   :  { %v1522_v30 = vsel %vm550_vm6, 1.0, %v1896_v21  ;;  %886 = vst.msk [vmem:[#allocation3 + $0x260] sm:$0xff] %vm809_vm0, %v1521_v27  ;;  %vm356_vm7 = vcmp.ge.s32.totalorder %v244_v26, 0  ;;  %vm467_vm8 = vcmp.lt.s32.totalorder %v243_v25, 32  ;;  %vm468_vm9 = vcmp.lt.s32.totalorder %v244_v26, 32  ;;  %v1124_v25 = vld [vmem:[#allocation3 + $0x2b8] sm:$0xff] }
  0xc3   :  { %887 = vst.msk [vmem:[#allocation3 + $0x268] sm:$0xff] %vm809_vm0, %v1522_v30  ;;  %vm579_vm10 = vmand %vm355_vm5, %vm467_vm8  ;;  %v232_v31 = vsub.s32 %v117_v28, %v1932_v7  ;;  %vm343_vm12 = vcmp.ge.s32.totalorder %v231_v29, 0  ;;  %vm455_vm14 = vcmp.lt.s32.totalorder %v231_v29, 32  ;;  %v100_v33 = vadd.s32 624, %v1928_v3  ;;  %v1107_v28 = vld [vmem:[#allocation3 + $0x230] sm:$0xff]  ;;  %v1108_v30 = vld [vmem:[#allocation3 + $0x238] sm:$0xff] }
  0xc4   :  { %vm580_vm13 = vmand %vm356_vm7, %vm468_vm9  ;;  %v1551_v32 = vsel %vm579_vm10, 1.0, %v1896_v21  ;;  %v101_v34 = vadd.s32 632, %v1928_v3  ;;  %v130_v39 = vadd.s32 864, %v1928_v3  ;;  %v131_v41 = vadd.s32 872, %v1928_v3 }
  0xc5   :  { %v1552_v35 = vsel %vm580_vm13, 1.0, %v1896_v21  ;;  %916 = vst.msk [vmem:[#allocation3 + $0x350] sm:$0xff] %vm809_vm0, %v1551_v32  ;;  %vm344_vm15 = vcmp.ge.s32.totalorder %v232_v31, 0  ;;  %vm456_vm1 = vcmp.lt.s32.totalorder %v232_v31, 32  ;;  %vm567_vm3 = vmand %vm343_vm12, %vm455_vm14  ;;  %v215_v37 = vsub.s32 %v100_v33, %v1932_v7  ;;  %v1137_v31 = vld [vmem:[#allocation3 + $0x320] sm:$0xff]  ;;  %v1138_v32 = vld [vmem:[#allocation3 + $0x328] sm:$0xff] }
  0xc6   :  { %917 = vst.msk [vmem:[#allocation3 + $0x358] sm:$0xff] %vm809_vm0, %v1552_v35  ;;  %vm568_vm4 = vmand %vm344_vm15, %vm456_vm1  ;;  %v1539_v36 = vsel %vm567_vm3, 1.0, %v1896_v21  ;;  %v216_v38 = vsub.s32 %v101_v34, %v1932_v7  ;;  %v132_v42 = vadd.s32 880, %v1928_v3  ;;  %v133_v43 = vadd.s32 888, %v1928_v3  ;;  %v1125_v34 = vld [vmem:[#allocation3 + $0x2c0] sm:$0xff]  ;;  %v1126_v35 = vld [vmem:[#allocation3 + $0x2c8] sm:$0xff] }
  0xc7   :  { %v1540_v40 = vsel %vm568_vm4, 1.0, %v1896_v21  ;;  %904 = vst.msk [vmem:[#allocation3 + $0x2f0] sm:$0xff] %vm809_vm0, %v1539_v36  ;;  %vm327_vm11 = vcmp.ge.s32.totalorder %v215_v37, 0  ;;  %vm439_vm5 = vcmp.lt.s32.totalorder %v215_v37, 32  ;;  %v245_v44 = vsub.s32 %v130_v39, %v1932_v7 }
  0xc8   :  { %905 = vst.msk [vmem:[#allocation3 + $0x2f8] sm:$0xff] %vm809_vm0, %v1540_v40  ;;  %vm328_vm6 = vcmp.ge.s32.totalorder %v216_v38, 0  ;;  %vm440_vm7 = vcmp.lt.s32.totalorder %v216_v38, 32  ;;  %vm551_vm8 = vmand %vm327_vm11, %vm439_vm5  ;;  %v246_v45 = vsub.s32 %v131_v41, %v1932_v7  ;;  %v247_v46 = vsub.s32 %v132_v42, %v1932_v7  ;;  %v1109_v38 = vld [vmem:[#allocation3 + $0x240] sm:$0xff]  ;;  %v1110_v40 = vld [vmem:[#allocation3 + $0x248] sm:$0xff] }
  0xc9   :  { %vm552_vm9 = vmand %vm328_vm6, %vm440_vm7  ;;  %v1523_v47 = vsel %vm551_vm8, 1.0, %v1896_v21  ;;  %v248_v48 = vsub.s32 %v133_v43, %v1932_v7  ;;  %vm357_vm10 = vcmp.ge.s32.totalorder %v245_v44, 0  ;;  %vm469_vm13 = vcmp.lt.s32.totalorder %v245_v44, 32  ;;  %v1139_v41 = vld [vmem:[#allocation3 + $0x330] sm:$0xff]  ;;  %v1140_v42 = vld [vmem:[#allocation3 + $0x338] sm:$0xff] }
  0xca   :  { %v1524_v3 = vsel %vm552_vm9, 1.0, %v1896_v21  ;;  %888 = vst.msk [vmem:[#allocation3 + $0x270] sm:$0xff] %vm809_vm0, %v1523_v47  ;;  %vm358_vm12 = vcmp.ge.s32.totalorder %v246_v45, 0  ;;  %vm470_vm14 = vcmp.lt.s32.totalorder %v246_v45, 32  ;;  %vm359_vm15 = vcmp.ge.s32.totalorder %v247_v46, 0  ;;  %vm581_vm1 = vmand %vm357_vm10, %vm469_vm13  ;;  %v1127_v43 = vld [vmem:[#allocation3 + $0x2d0] sm:$0xff] }
  0xcb   :  { %889 = vst.msk [vmem:[#allocation3 + $0x278] sm:$0xff] %vm809_vm0, %v1524_v3  ;;  %vm360_vm3 = vcmp.ge.s32.totalorder %v248_v48, 0  ;;  %vm471_vm4 = vcmp.lt.s32.totalorder %v247_v46, 32  ;;  %vm472_vm11 = vcmp.lt.s32.totalorder %v248_v48, 32  ;;  %vm582_vm6 = vmand %vm358_vm12, %vm470_vm14  ;;  %v1553_v49 = vsel %vm581_vm1, 1.0, %v1896_v21  ;;  %v1128_v44 = vld [vmem:[#allocation3 + $0x2d8] sm:$0xff] }
  0xcc   :  { %v1554_v7 = vsel %vm582_vm6, 1.0, %v1896_v21  ;;  %918 = vst.msk [vmem:[#allocation3 + $0x360] sm:$0xff] %vm809_vm0, %v1553_v49  ;;  %vm583_vm5 = vmand %vm359_vm15, %vm471_vm4  ;;  %vm970_vm8 = vcmask 1048320   ;;  %vm2483_vm9 = vcmask 785408   ;;  %vm993_vm10 = vcmask 1047808   ;;  %v1112_v48 = vld [vmem:[#allocation3 + $0x258] sm:$0xff] }
  0xcd   :  { %919 = vst.msk [vmem:[#allocation3 + $0x368] sm:$0xff] %vm809_vm0, %v1554_v7  ;;  %vm584_vm7 = vmand %vm360_vm3, %vm472_vm11  ;;  %v1555_v50 = vsel %vm583_vm5, 1.0, %v1896_v21  ;;  %vm2484_vm12 = vcmask 523264   ;;  %vm1004_vm13 = vcmask 1048064   ;;  %v1780_v63 = vpack.c.bf16 %v1102_v58, %v1101_v57  ;;  %v1141_v3 = vld [vmem:[#allocation3 + $0x340] sm:$0xff]  ;;  %v1142_v49 = vld [vmem:[#allocation3 + $0x348] sm:$0xff] }
  0xce   :  { %v1556_v51 = vsel %vm584_vm7, 1.0, %v1896_v21  ;;  %920 = vst.msk [vmem:[#allocation3 + $0x370] sm:$0xff] %vm809_vm0, %v1555_v50  ;;  %v1782_v6 = vpack.c.bf16 %v1120_v61, %v1119_v60  ;;  %vm2485_vm14 = vmmov %vm2484_vm12  ;;  %v1784_v13 = vpack.c.bf16 %v1104_v1, %v1103_v0  ;;  %v1811_v14 = vpack.c.bf16 %v1134_v9, %v1133_v8  ;;  %v1129_v7 = vld [vmem:[#allocation3 + $0x2e0] sm:$0xff]  ;;  %v1130_v50 = vld [vmem:[#allocation3 + $0x2e8] sm:$0xff] }
  0xcf   :  { %921 = vst.msk [vmem:[#allocation3 + $0x378] sm:$0xff] %vm809_vm0, %v1556_v51  ;;  %v1786_v20 = vpack.c.bf16 %v1122_v12, %v1121_v11  ;;  %v1788_v26 = vpack.c.bf16 %v1106_v16, %v1105_v15  ;;  %v1814_v27 = vpack.c.bf16 %v1136_v23, %v1135_v22  ;;  %v1790_v29 = vpack.c.bf16 %v1124_v25, %v1123_v24  ;;  %v1144_v57 = vld [vmem:[#allocation3 + $0x358] sm:$0xff]  ;;  %v1131_v58 = vld [vmem:[#allocation3 + $0x2f0] sm:$0xff] }
  0xd0   :  { %vm1898_vm15 = vmmov 0   ;;  %v1792_v36 = vpack.c.bf16 %v1108_v30, %v1107_v28  ;;  %v1817_v37 = vpack.c.bf16 %v1138_v32, %v1137_v31  ;;  %v1794_v39 = vpack.c.bf16 %v1126_v35, %v1125_v34 }
  0xd1   :  { %v1796_v45 = vpack.c.bf16 %v1110_v40, %v1109_v38  ;;  %v1820_v46 = vpack.c.bf16 %v1140_v42, %v1139_v41  ;;  %v1798_v47 = vpack.c.bf16 %v1128_v44, %v1127_v43 }
  0xd2   :  { %v1116_v0 = vld [vmem:[#allocation3 + $0x278] sm:$0xff] }
  0xd3   :  { %v1145_v1 = vld [vmem:[#allocation3 + $0x360] sm:$0xff] }
  0xd5   :  { %v1147_v8 = vld [vmem:[#allocation3 + $0x370] sm:$0xff] }
  0xd6   :  { %v1148_v9 = vld [vmem:[#allocation3 + $0x378] sm:$0xff] }
  0xfe   :  { %v965_v52 = vpop.permute.xlu1 %964 }
  0xff   :  { %973 = vst.msk [vmem:[#allocation2 + $0x18] sm:$0xff] %vm934_vm2, %v965_v52 }
 0x100   :  { %v963_v53 = vpop.permute.xlu0 %962 }
 0x101   :  { %v966_v54 = vsel %vm2483_vm9, %v963_v53, %v965_v52  ;;  %971 = vst.msk [vmem:[#allocation2 + $0x8] sm:$0xff] %vm970_vm8, %v963_v53  ;;  %v1823_v52 = vpack.c.bf16 %v1142_v49, %v1141_v3  ;;  %v1113_v53 = vld [vmem:[#allocation3 + $0x260] sm:$0xff] }
 0x102   :  { %v989_v55 = vpop.permute.xlu1 %988 }
 0x104   :  { %v987_v56 = vpop.permute.xlu0 %986 }
 0x105   :  { %v990_v59 = vsel %vm934_vm2, %v987_v56, %v989_v55  ;;  %994 = vst.msk [vmem:[#allocation2 + $0x18] sm:$0xff] %vm993_vm10, %v987_v56  ;;  %v1114_v55 = vld [vmem:[#allocation3 + $0x268] sm:$0xff]  ;;  %v1143_v56 = vld [vmem:[#allocation3 + $0x350] sm:$0xff] }
 0x106   :  { %995 = vst.msk [vmem:[#allocation2 + $0x20] sm:$0xff] %vm2484_vm12, %v990_v59  ;;  %v1012_v62 = vpop.permute.xlu1 %1011  ;;  %v1132_v59 = vld [vmem:[#allocation3 + $0x2f8] sm:$0xff]  ;;  %v1804_v60 = vpack.c.bf16 %v1114_v55, %v1113_v53  ;;  %v1826_v61 = vpack.c.bf16 %v1144_v57, %v1143_v56 }
 0x107   :  { %1015 = vst.msk [vmem:[#allocation2 + $0x30] sm:$0xff] %vm934_vm2, %v1012_v62  ;;  %vm1022_vm2 = vcmask 785664  }
 0x108   :  { %v1002_v2 = vpop.permute.xlu0 %1001  ;;  %v1031_v4 = vld [vmem:[#allocation2 + $0x8] sm:$0xff] }
 0x109   :  { %1005 = vst.msk [vmem:[#allocation2 + $0x20] sm:$0xff] %vm1004_vm13, %v1002_v2  ;;  %1213 = vmatprep.mubr.f32.mxu0 %v1031_v4 }
 0x10a   :  { %1006 = vst.msk [vmem:[#allocation2 + $0x28] sm:$0xff] %vm2485_vm14, %v1002_v2  ;;  %1214 = vmatmul.mubr.f32.vlgmr.msra.gmra.mrb[0].mxu0 %v1030_v10  ;;  %v1027_v17 = vpop.permute.xlu1 %1026  ;;  %v1146_v2 = vld [vmem:[#allocation3 + $0x368] sm:$0xff]  ;;  %v1832_v10 = vpack.c.bf16 %v1148_v9, %v1147_v8 }
 0x10b   :  { %1014 = vst.msk [vmem:[#allocation2 + $0x28] sm:$0xff] %vm1004_vm13, %v1012_v62  ;;  %1781 = vmatpush3.bf16.msra.mxu0 %v1780_v63  ;;  %v1115_v62 = vld [vmem:[#allocation3 + $0x270] sm:$0xff]  ;;  %v1806_v63 = vpack.c.bf16 %v1132_v59, %v1131_v58 }
 0x10c   :  { %v1020_v18 = vpop.permute.xlu0 %1019  ;;  %v1033_v19 = vld [vmem:[#allocation2 + $0x18] sm:$0xff]  ;;  %1783 = vmatprep.subr.bf16.mxu0 %v1782_v6  ;;  %v1808_v4 = vpack.c.bf16 %v1116_v0, %v1115_v62  ;;  %v1829_v6 = vpack.c.bf16 %v1146_v2, %v1145_v1 }
 0x10d   :  { %1023 = vst.msk [vmem:[#allocation2 + $0x30] sm:$0xff] %vm1022_vm2, %v1020_v18  ;;  %1283 = vmatprep.mubr.f32.mxu1 %v1033_v19 }
 0x10e   :  { %1284 = vmatmul.mubr.f32.vlgmr.msra.gmra.mrb[0].mxu1 %v966_v54  ;;  %1029 = vst.msk [vmem:[#allocation2 + $0x30] sm:$0xff] %vm970_vm8, %v1027_v17  ;;  %v1802_v54 = vpack.c.bf16 %v1130_v50, %v1129_v7 }
 0x10f   :  { %1785 = vmatpush3.bf16.msra.mxu0 %v1784_v13  ;;  %1812 = vmatpush3.bf16.msra.mxu1 %v1811_v14 }
 0x110   :  { %1787 = vmatprep.subr.bf16.mxu0 %v1786_v20  ;;  %1813 = vmatprep.subr.bf16.mxu1 %v1897_v5  ;;  %v1034_v11 = vld [vmem:[#allocation2 + $0x20] sm:$0xff] }
 0x111   :  { %1711 = vmatprep.mubr.msk.f32.mxu1 %vm1898_vm15, %v1896_v21  ;;  %v1111_v21 = vld [vmem:[#allocation3 + $0x250] sm:$0xff] }
 0x112   :  { %v1035_v33 = vld [vmem:[#allocation2 + $0x28] sm:$0xff]  ;;  %v1800_v51 = vpack.c.bf16 %v1112_v48, %v1111_v21 }
 0x113   :  { %1353 = vmatprep.mubr.f32.mxu0 %v1035_v33  ;;  %1789 = vmatpush3.bf16.msra.mxu0 %v1788_v26 }
 0x114   :  { %1815 = vmatpush3.bf16.msra.mxu1 %v1814_v27  ;;  %1791 = vmatprep.subr.bf16.mxu0 %v1790_v29 }
 0x115   :  { %1816 = vmatprep.subr.bf16.mxu1 %v1897_v5  ;;  %v1036_v12 = vld [vmem:[#allocation2 + $0x30] sm:$0xff] }
 0x117   :  { %1793 = vmatpush3.bf16.msra.mxu0 %v1792_v36 }
 0x118   :  { %1818 = vmatpush3.bf16.msra.mxu1 %v1817_v37  ;;  %1795 = vmatprep.subr.bf16.mxu0 %v1794_v39 }
 0x119   :  { %1819 = vmatprep.subr.bf16.mxu1 %v1897_v5 }
 0x11b   :  { %1797 = vmatpush3.bf16.msra.mxu0 %v1796_v45 }
 0x11c   :  { %1821 = vmatpush3.bf16.msra.mxu1 %v1820_v46  ;;  %1799 = vmatprep.subr.bf16.mxu0 %v1798_v47 }
 0x11d   :  { %1822 = vmatprep.subr.bf16.mxu1 %v1897_v5 }
 0x11f   :  { %1801 = vmatpush3.bf16.msra.mxu0 %v1800_v51 }
 0x120   :  { %1824 = vmatpush3.bf16.msra.mxu1 %v1823_v52  ;;  %1803 = vmatprep.subr.bf16.mxu0 %v1802_v54 }
 0x121   :  { %1825 = vmatprep.subr.bf16.mxu1 %v1897_v5 }
 0x123   :  { %1805 = vmatpush3.bf16.msra.mxu0 %v1804_v60 }
 0x124   :  { %1827 = vmatpush3.bf16.msra.mxu1 %v1826_v61  ;;  %1807 = vmatprep.subr.bf16.mxu0 %v1806_v63 }
 0x125   :  { %1828 = vmatprep.subr.bf16.mxu1 %v1897_v5 }
 0x127   :  { %1809 = vmatpush3.bf16.msra.mxu0 %v1808_v4 }
 0x128   :  { %1830 = vmatpush3.bf16.msra.mxu1 %v1829_v6 }
 0x129   :  { %1831 = vmatprep.subr.bf16.mxu1 %v1897_v5 }
 0x12a   :  { %1354 = vmatmul.mubr.f32.vlgmr.msra.gmra.mrb[2].mxu0 %v1034_v11 }
 0x12c   :  { %1833 = vmatpush3.bf16.msra.mxu1 %v1832_v10 }
 0x12f   :  { %1712 = vmatmul.mubr.f32.vlgmr.msra.gmra.mrb[2].mxu1 %v1036_v12 }
 0x1dd   :  { %v1589_v13 = vpop.f32.mrb[0].mxu0 }
 0x1de   :  { %v1590_v14 = vpop.f32.mrb[1].mxu0 }
 0x1df   :  { %v1591_v15 = vadd.f32 %v1590_v14, %v1589_v13 }
 0x1e1   :  { %v1624_v16 = vpop.f32.mrb[0].mxu1 }
 0x1e2   :  { %v1625_v17 = vpop.f32.mrb[1].mxu1 }
 0x1e3   :  { %v1626_v18 = vadd.f32 %v1625_v17, %v1624_v16 }
 0x1e5   :  { %v1286_v19 = vadd.f32 %v1626_v18, %v1591_v15 }
 0x1fd   :  { %v1659_v20 = vpop.f32.mrb[2].mxu0 }
 0x1fe   :  { %v1660_v22 = vpop.f32.mrb[3].mxu0 }
 0x1ff   :  { %v1661_v23 = vadd.f32 %v1660_v22, %v1659_v20 }
 0x201   :  { %v1356_v24 = vadd.f32 %v1661_v23, %v1286_v19 }
 0x202   :  { %v1425_v25 = vpop.f32.mrb[2].mxu1 }
 0x203   :  { %v1713_v5 = vpop.f32.mrb[3].mxu1  ;;  %v1426_v26 = vadd.f32 %v1425_v25, %v1356_v24 }
 0x205   :  { %1429 = vst.msk [vmem:[#allocation7] sm:$0xff] %vm809_vm0, %v1426_v26 }
 0x206   :  { %1877 = shalt.err (!%p1874_p12)
}
 0x207   :  { %s1878_s25 = scalar_lea.hbm %s2476_s1, 128 }
 0x208   :  { %p1879_p13 = scmp.ne.s32.totalorder %s2476_s1, %s1878_s25  ;;  %p1882_p0 = scmp.lt.u32.totalorder %s1878_s25, %s2476_s1 }
 0x20a   :  { %p1884_p1 = pnand %p1882_p0, %p1879_p13 }
 0x20c   :  { %1887 = shalt.err (!%p1884_p1)
}
 0x20d   :  { %1439 = dma.vmem_to_hbm [thread:$0]  %s1437_s21, 128, %s2476_s1, [#allocation6]  }
 0x20e   :  { %1890 = dma.done.wait [#allocation6], 128  }
 0x20f   :  { %1891 = vsyncadd [#allocation6], 4294967168 }
 0x210   :  { %1443 = vsyncpa [#allocation5], 1 }
 0x211   :  { %1444 = vsyncpa [#allocation6], 1 }

</bundles_post_ra>
